<compile_context>
chip_gen: v5e
topology: v5e:2x2
jax: 0.10.0
libtpu: 0.0.40
codegen_flags: <defaults>
</compile_context>

<pallas_src>
import functools
import math

import jax
import jax.numpy as jnp
from jax import lax
from jax.experimental import pallas as pl
from jax.experimental.pallas import tpu as pltpu

CFG = dict(
    unified_features_dim=16,
    encoded_input_dim=8,      # Actor's input_dim
    rnn_input_dim=8,
    rnn_hidden_dim=16,
    rnn_num_layers=1,
    action1_1_dim=3,
    action1_2_dim=1,
    action2_1_dim=8,
    action2_2_dim=1,
    max_action_len=8,
)

_VMEM = pl.BlockSpec(memory_space=pltpu.MemorySpace.VMEM)

_STD = 0.1
_LOG_STD = math.log(_STD)
_LOG_SQRT_2PI = 0.5 * math.log(2.0 * math.pi)
_STOP_TOKEN = 5.0            # `while action2_1[0] != 5` in the reference


# ---------------------------------------------------------------- kernel helpers

def _normal_logprob(x, mean):
    return -((x - mean) ** 2) / (2.0 * _STD * _STD) - _LOG_STD - _LOG_SQRT_2PI


def _categorical_from_gumbel(logits, gumbel):
    """Gumbel-max sample of Categorical(softmax(logits)) on a (1, K) row.

    Returns (index as float32 (1,1), log-prob of the sampled index (1,1)).
    """
    k = logits.shape[1]
    lane = lax.broadcasted_iota(jnp.int32, (1, k), 1).astype(jnp.float32)
    pert = logits + gumbel
    pmax = jnp.max(pert, axis=1, keepdims=True)
    idx = jnp.max(jnp.where(pert >= pmax, lane, -1.0), axis=1, keepdims=True)
    lmax = jnp.max(logits, axis=1, keepdims=True)
    lse = jnp.log(jnp.sum(jnp.exp(logits - lmax), axis=1, keepdims=True)) + lmax
    sel = jnp.sum(jnp.where(lane == idx, logits, 0.0), axis=1, keepdims=True)
    return idx, sel - lse


# ---------------------------------------------------------------- fused kernel

def _ppo_fused_kernel(
    state_ref,
    enc_w_ref, enc_b_ref,
    cr1_w_ref, cr1_b_ref, cr2_wr_ref, cr2_b_ref,
    a11_w_ref, a11_b_ref,
    a12_wxr_ref, a12_wa_ref, a12_b_ref,
    henc_wx_ref, henc_wa1_ref, henc_wa2_ref, henc_b_ref,
    gru_xw_ref, gru_wh_ref,
    head_w_ref, head_b_ref,
    g1_ref, g2_ref, nrm_ref,
    value_ref, action_ref, logprob_ref, len2_ref,
):
    f32 = jnp.float32
    H = gru_wh_ref.shape[0]                 # rnn_hidden_dim
    n_steps = action_ref.shape[1] - 2       # max_action_len - 2 (fixed trip count)
    a21 = head_b_ref.shape[1] - 1           # action2_1_dim (categorical width)

    # ---- Encoder: unified features -> encoded state ----
    enc = (jnp.dot(state_ref[...], enc_w_ref[...], preferred_element_type=f32)
           + enc_b_ref[...])                                            # (1, D)

    # ---- Critic: Linear(D,32) -> tanh -> Linear(32,1) (1-wide head as row-dot)
    h1 = jnp.tanh(jnp.dot(enc, cr1_w_ref[...], preferred_element_type=f32)
                  + cr1_b_ref[...])
    value_ref[...] = (jnp.sum(h1 * cr2_wr_ref[...], axis=1, keepdims=True)
                      + cr2_b_ref[...])

    # ---- action1_1: Categorical over 3 classes (padded to 8 lanes) ----
    logits11 = (jnp.dot(enc, a11_w_ref[...], preferred_element_type=f32)
                + a11_b_ref[...])                                       # (1, 8)
    a11, lp = _categorical_from_gumbel(logits11, g1_ref[...])

    # ---- action1_2: Normal(mean, 0.1); Linear(D+1,1) decomposed (no concat) ----
    nrm = nrm_ref[...]                                                  # (1, n_steps)
    a12_mean = (jnp.sum(enc * a12_wxr_ref[...], axis=1, keepdims=True)
                + a11 * a12_wa_ref[...] + a12_b_ref[...])
    a12 = a12_mean + _STD * nrm[:, 0:1]
    lp = lp + _normal_logprob(a12, a12_mean)

    # ---- Actor.encoder([enc, action1]) -> initial GRU hidden (decomposed) ----
    hidden = (jnp.dot(enc, henc_wx_ref[...], preferred_element_type=f32)
              + a11 * henc_wa1_ref[...] + a12 * henc_wa2_ref[...]
              + henc_b_ref[...])                                        # (1, H)

    gi = gru_xw_ref[...]        # (1, 3H): x @ [Wir|Wiz|Win] for the fixed one-hot input
    wh = gru_wh_ref[...]        # (H, 3H): [Whr|Whz|Whn]
    head_w = head_w_ref[...]    # (H, a21+1): packed [actor2_1 | actor2_2]
    head_b = head_b_ref[...]
    g2 = g2_ref[...]            # (1, n_cat*a21): Gumbel rows for categorical steps

    lane = lax.broadcasted_iota(jnp.int32, (1, n_steps + 2), 1).astype(f32)
    act = jnp.where(lane == 0.0, a11, jnp.where(lane == 1.0, a12, 0.0))

    active = jnp.ones((1, 1), f32)   # 1.0 until a categorical step samples the stop token
    cnt = jnp.zeros((1, 1), f32)     # number of valid action2 columns

    # Fixed-trip, fully-unrolled sampling loop (replaces the data-dependent while).
    for t in range(n_steps):
        # GRU cell (bias=False): r/z/n gates from a single packed matmul.
        gh = jnp.dot(hidden, wh, preferred_element_type=f32)            # (1, 3H)
        r = jax.nn.sigmoid(gi[:, 0:H] + gh[:, 0:H])
        z = jax.nn.sigmoid(gi[:, H:2 * H] + gh[:, H:2 * H])
        n = jnp.tanh(gi[:, 2 * H:3 * H] + r * gh[:, 2 * H:3 * H])
        hidden = (1.0 - z) * n + z * hidden

        head = (jnp.dot(hidden, head_w, preferred_element_type=f32)
                + head_b)                                               # (1, a21+1)

        if t % 2 == 0:   # categorical head (actor2_1)
            j = t // 2
            val, lp_step = _categorical_from_gumbel(
                head[:, 0:a21], g2[:, j * a21:(j + 1) * a21])
            hit_stop = (val == _STOP_TOKEN).astype(f32)
        else:            # gaussian head (actor2_2)
            mean = head[:, a21:a21 + 1]
            val = mean + _STD * nrm[:, t:t + 1]
            lp_step = _normal_logprob(val, mean)
            hit_stop = jnp.zeros((1, 1), f32)

        lp = lp + active * lp_step
        cnt = cnt + active
        keep = jnp.logical_and(lane == float(t + 2), active > 0.0)
        act = jnp.where(keep, val, act)
        active = active * (1.0 - hit_stop)

    action_ref[...] = act
    logprob_ref[...] = lp
    len2_ref[...] = cnt


# ---------------------------------------------------------------- parameters

def _init_linear(key, in_dim, out_dim):
    k1, k2 = jax.random.split(key)
    bound = 1.0 / math.sqrt(in_dim)
    w = jax.random.uniform(k1, (in_dim, out_dim), jnp.float32, -bound, bound)
    b = jax.random.uniform(k2, (1, out_dim), jnp.float32, -bound, bound)
    return w, b


def init_params(key, cfg):
    """PyTorch-layout params (weights stored transposed: [in, out])."""
    keys = jax.random.split(key, 9)
    D = cfg['encoded_input_dim']
    H = cfg['rnn_hidden_dim']
    I = cfg['rnn_input_dim']
    p = {}
    p['enc_w'], p['enc_b'] = _init_linear(keys[0], cfg['unified_features_dim'], D)
    p['cr1_w'], p['cr1_b'] = _init_linear(keys[1], D, 32)
    p['cr2_w'], p['cr2_b'] = _init_linear(keys[2], 32, 1)
    p['a11_w'], p['a11_b'] = _init_linear(keys[3], D, cfg['action1_1_dim'])
    p['a12_w'], p['a12_b'] = _init_linear(keys[4], D + 1, 1)
    p['henc_w'], p['henc_b'] = _init_linear(keys[5], D + 2, H)          # Actor.encoder
    p['a21_w'], p['a21_b'] = _init_linear(keys[6], H, cfg['action2_1_dim'])
    p['a22_w'], p['a22_b'] = _init_linear(keys[7], H, cfg['action2_2_dim'])
    gb = 1.0 / math.sqrt(H)
    gk = jax.random.split(keys[8], 6)
    p['gru_wir'] = jax.random.uniform(gk[0], (I, H), jnp.float32, -gb, gb)
    p['gru_wiz'] = jax.random.uniform(gk[1], (I, H), jnp.float32, -gb, gb)
    p['gru_win'] = jax.random.uniform(gk[2], (I, H), jnp.float32, -gb, gb)
    p['gru_whr'] = jax.random.uniform(gk[3], (H, H), jnp.float32, -gb, gb)
    p['gru_whz'] = jax.random.uniform(gk[4], (H, H), jnp.float32, -gb, gb)
    p['gru_whn'] = jax.random.uniform(gk[5], (H, H), jnp.float32, -gb, gb)
    return p


def pack_params(p, cfg):
    """One-time packing/transposing of params for the fused kernel."""
    I = cfg['rnn_input_dim']
    pad_to = max(8, p['a11_w'].shape[1])
    a11_pad = pad_to - p['a11_w'].shape[1]
    gru_wi = jnp.concatenate([p['gru_wir'], p['gru_wiz'], p['gru_win']], axis=1)  # (I,3H)
    return dict(
        enc_w=p['enc_w'], enc_b=p['enc_b'],
        cr1_w=p['cr1_w'], cr1_b=p['cr1_b'],
        cr2_wr=p['cr2_w'].T,                    # (1, 32) row for a VPU dot
        cr2_b=p['cr2_b'],
        # 3-class head padded to 8 lanes; -1e9 bias => padded classes never sampled
        a11_w=jnp.concatenate(
            [p['a11_w'], jnp.zeros((p['a11_w'].shape[0], a11_pad), jnp.float32)], axis=1),
        a11_b=jnp.concatenate(
            [p['a11_b'], jnp.full((1, a11_pad), -1e9, jnp.float32)], axis=1),
        # actor1_2 Linear(D+1,1) decomposed: state part as a row + action1_1 scalar weight
        a12_wxr=p['a12_w'][:-1, :].T,           # (1, D)
        a12_wa=p['a12_w'][-1:, :],              # (1, 1)
        a12_b=p['a12_b'],
        # Actor.encoder Linear(D+2, H) decomposed the same way (no in-kernel concat)
        henc_wx=p['henc_w'][:-2, :],            # (D, H)
        henc_wa1=p['henc_w'][-2:-1, :],         # (1, H)
        henc_wa2=p['henc_w'][-1:, :],           # (1, H)
        henc_b=p['henc_b'],
        # GRU input path: rnn_x is the fixed one-hot(I-1) every step -> constant row
        gru_xw=gru_wi[I - 1:I, :],              # (1, 3H)
        gru_wh=jnp.concatenate([p['gru_whr'], p['gru_whz'], p['gru_whn']], axis=1),  # (H,3H)
        # packed per-step heads: [actor2_1 (H,A21) | actor2_2 (H,1)]
        head_w=jnp.concatenate([p['a21_w'], p['a22_w']], axis=1),
        head_b=jnp.concatenate([p['a21_b'], p['a22_b']], axis=1),
    )


# ---------------------------------------------------------------- forward

@functools.partial(jax.jit, static_argnames=('max_action_len',))
def _ppo_forward_device(packed, state, key, max_action_len):
    n_loop = max_action_len - 2
    a21 = packed['head_b'].shape[1] - 1
    n_cat = (n_loop + 1) // 2

    kg1, kg2, kn = jax.random.split(key, 3)
    g1 = jax.random.gumbel(kg1, (1, packed['a11_b'].shape[1]), jnp.float32)
    g2 = jax.random.gumbel(kg2, (1, n_cat * a21), jnp.float32)
    nrm = jax.random.normal(kn, (1, n_loop), jnp.float32)

    inputs = (
        state,
        packed['enc_w'], packed['enc_b'],
        packed['cr1_w'], packed['cr1_b'], packed['cr2_wr'], packed['cr2_b'],
        packed['a11_w'], packed['a11_b'],
        packed['a12_wxr'], packed['a12_wa'], packed['a12_b'],
        packed['henc_wx'], packed['henc_wa1'], packed['henc_wa2'], packed['henc_b'],
        packed['gru_xw'], packed['gru_wh'],
        packed['head_w'], packed['head_b'],
        g1, g2, nrm,
    )
    out_shape = (
        jax.ShapeDtypeStruct((1, 1), jnp.float32),             # value
        jax.ShapeDtypeStruct((1, n_loop + 2), jnp.float32),    # full (padded) action row
        jax.ShapeDtypeStruct((1, 1), jnp.float32),             # action log-prob
        jax.ShapeDtypeStruct((1, 1), jnp.float32),             # valid action2 length
    )
    return pl.pallas_call(
        _ppo_fused_kernel,
        out_shape=out_shape,
        in_specs=[_VMEM] * len(inputs),
        out_specs=(_VMEM, _VMEM, _VMEM, _VMEM),
    )(*inputs)


def ppo_forward(packed_params, state, cfg, key):
    """Mirrors PPO.forward(state) -> (value, action) (+ the actor's log-prob)."""
    assert state.shape[0] == 1, "sampling path requires batch_size == 1 (as in the reference)"
    value, action_full, logprob, len2 = _ppo_forward_device(
        packed_params, state, key, max_action_len=cfg['max_action_len'])
    # TODO(synk): the action width is data-dependent (stop token == 5), so one
    # device->host sync + slice remains here; everything else is a single fused
    # Pallas kernel launch.
    n2 = int(jax.device_get(len2)[0, 0])
    action = action_full[:, :2 + n2]
    return value, action, logprob


# ---------------------------------------------------------------- main

if __name__ == "__main__":
    cfg = CFG
    root = jax.random.PRNGKey(0)
    pkey, skey, dkey = jax.random.split(root, 3)

    params = init_params(pkey, cfg)
    packed = pack_params(params, cfg)
    state = jax.random.normal(dkey, (1, cfg['unified_features_dim']), jnp.float32)

    value, action, logprob = ppo_forward(packed, state, cfg, skey)
    jax.block_until_ready((value, action, logprob))

    assert value.shape == (1, 1)
    assert logprob.shape == (1, 1)
    assert action.ndim == 2 and action.shape[0] == 1
    assert 3 <= action.shape[1] <= cfg['max_action_len']
    print("KERNEL_OK")
</pallas_src>

<mosaic_0001>
module attributes {stable_mosaic.version = 11 : i64} {
  func.func @_ppo_fused_kernel(%arg0: memref<1x16xf32, #tpu.memory_space<vmem>>, %arg1: memref<16x8xf32, #tpu.memory_space<vmem>>, %arg2: memref<1x8xf32, #tpu.memory_space<vmem>>, %arg3: memref<8x32xf32, #tpu.memory_space<vmem>>, %arg4: memref<1x32xf32, #tpu.memory_space<vmem>>, %arg5: memref<1x32xf32, #tpu.memory_space<vmem>>, %arg6: memref<1x1xf32, #tpu.memory_space<vmem>>, %arg7: memref<8x8xf32, #tpu.memory_space<vmem>>, %arg8: memref<1x8xf32, #tpu.memory_space<vmem>>, %arg9: memref<1x8xf32, #tpu.memory_space<vmem>>, %arg10: memref<1x1xf32, #tpu.memory_space<vmem>>, %arg11: memref<1x1xf32, #tpu.memory_space<vmem>>, %arg12: memref<8x16xf32, #tpu.memory_space<vmem>>, %arg13: memref<1x16xf32, #tpu.memory_space<vmem>>, %arg14: memref<1x16xf32, #tpu.memory_space<vmem>>, %arg15: memref<1x16xf32, #tpu.memory_space<vmem>>, %arg16: memref<1x48xf32, #tpu.memory_space<vmem>>, %arg17: memref<16x48xf32, #tpu.memory_space<vmem>>, %arg18: memref<16x9xf32, #tpu.memory_space<vmem>>, %arg19: memref<1x9xf32, #tpu.memory_space<vmem>>, %arg20: memref<1x8xf32, #tpu.memory_space<vmem>>, %arg21: memref<1x24xf32, #tpu.memory_space<vmem>>, %arg22: memref<1x6xf32, #tpu.memory_space<vmem>>, %arg23: memref<1x1xf32, #tpu.memory_space<vmem>>, %arg24: memref<1x8xf32, #tpu.memory_space<vmem>>, %arg25: memref<1x1xf32, #tpu.memory_space<vmem>>, %arg26: memref<1x1xf32, #tpu.memory_space<vmem>>) attributes {dimension_semantics = [], scalar_prefetch = 0 : i64, scratch_operands = 0 : i64, tpu.core_type = #tpu.core_type<tc>} {
    %c0 = arith.constant 0 : index
    %c0_0 = arith.constant 0 : index
    %0 = vector.load %arg0[%c0, %c0_0] : memref<1x16xf32, #tpu.memory_space<vmem>>, vector<1x16xf32>
    %c0_1 = arith.constant 0 : index
    %c0_2 = arith.constant 0 : index
    %1 = vector.load %arg1[%c0_1, %c0_2] : memref<16x8xf32, #tpu.memory_space<vmem>>, vector<16x8xf32>
    %cst = arith.constant dense<0.000000e+00> : vector<1x8xf32>
    %2 = tpu.matmul %0, %1, %cst {dimension_numbers = #tpu.dot_dimension_numbers<[1], [0], [0], [1], [0, 0, 1, 1], [], []>} : vector<1x16xf32>, vector<16x8xf32>, vector<1x8xf32> -> vector<1x8xf32>
    %c0_3 = arith.constant 0 : index
    %c0_4 = arith.constant 0 : index
    %3 = vector.load %arg2[%c0_3, %c0_4] : memref<1x8xf32, #tpu.memory_space<vmem>>, vector<1x8xf32>
    %4 = arith.addf %2, %3 : vector<1x8xf32>
    %c0_5 = arith.constant 0 : index
    %c0_6 = arith.constant 0 : index
    %5 = vector.load %arg3[%c0_5, %c0_6] : memref<8x32xf32, #tpu.memory_space<vmem>>, vector<8x32xf32>
    %cst_7 = arith.constant dense<0.000000e+00> : vector<1x32xf32>
    %6 = tpu.matmul %4, %5, %cst_7 {dimension_numbers = #tpu.dot_dimension_numbers<[1], [0], [0], [1], [0, 0, 1, 1], [], []>} : vector<1x8xf32>, vector<8x32xf32>, vector<1x32xf32> -> vector<1x32xf32>
    %c0_8 = arith.constant 0 : index
    %c0_9 = arith.constant 0 : index
    %7 = vector.load %arg4[%c0_8, %c0_9] : memref<1x32xf32, #tpu.memory_space<vmem>>, vector<1x32xf32>
    %8 = arith.addf %6, %7 : vector<1x32xf32>
    %9 = math.tanh %8 : vector<1x32xf32>
    %c0_10 = arith.constant 0 : index
    %c0_11 = arith.constant 0 : index
    %10 = vector.load %arg5[%c0_10, %c0_11] : memref<1x32xf32, #tpu.memory_space<vmem>>, vector<1x32xf32>
    %11 = arith.mulf %9, %10 : vector<1x32xf32>
    %cst_12 = arith.constant dense<0.000000e+00> : vector<1xf32>
    %12 = vector.multi_reduction <add>, %11, %cst_12 [1] : vector<1x32xf32> to vector<1xf32>
    %13 = vector.shape_cast %12 : vector<1xf32> to vector<1x1xf32>
    %c0_13 = arith.constant 0 : index
    %c0_14 = arith.constant 0 : index
    %14 = vector.load %arg6[%c0_13, %c0_14] : memref<1x1xf32, #tpu.memory_space<vmem>>, vector<1x1xf32>
    %15 = arith.addf %13, %14 : vector<1x1xf32>
    %c0_15 = arith.constant 0 : index
    %c0_16 = arith.constant 0 : index
    %16 = vector.load %arg23[%c0_15, %c0_16] : memref<1x1xf32, #tpu.memory_space<vmem>>, vector<1x1xf32>
    tpu.vector_store %arg23[%c0_15, %c0_16], %15 {strides = array<i32>} : memref<1x1xf32, #tpu.memory_space<vmem>>, vector<1x1xf32>,
    %c0_17 = arith.constant 0 : index
    %c0_18 = arith.constant 0 : index
    %17 = vector.load %arg7[%c0_17, %c0_18] : memref<8x8xf32, #tpu.memory_space<vmem>>, vector<8x8xf32>
    %cst_19 = arith.constant dense<0.000000e+00> : vector<1x8xf32>
    %18 = tpu.matmul %4, %17, %cst_19 {dimension_numbers = #tpu.dot_dimension_numbers<[1], [0], [0], [1], [0, 0, 1, 1], [], []>} : vector<1x8xf32>, vector<8x8xf32>, vector<1x8xf32> -> vector<1x8xf32>
    %c0_20 = arith.constant 0 : index
    %c0_21 = arith.constant 0 : index
    %19 = vector.load %arg8[%c0_20, %c0_21] : memref<1x8xf32, #tpu.memory_space<vmem>>, vector<1x8xf32>
    %20 = arith.addf %18, %19 : vector<1x8xf32>
    %c0_22 = arith.constant 0 : index
    %c0_23 = arith.constant 0 : index
    %21 = vector.load %arg20[%c0_22, %c0_23] : memref<1x8xf32, #tpu.memory_space<vmem>>, vector<1x8xf32>
    %22 = tpu.iota {dimensions = array<i32: 1>} : vector<1x8xi32>
    %23 = arith.sitofp %22 : vector<1x8xi32> to vector<1x8xf32>
    %24 = arith.addf %20, %21 : vector<1x8xf32>
    %cst_24 = arith.constant dense<0xFF800000> : vector<1xf32>
    %25 = vector.multi_reduction <maximumf>, %24, %cst_24 [1] : vector<1x8xf32> to vector<1xf32>
    %26 = vector.shape_cast %25 : vector<1xf32> to vector<1x1xf32>
    %27 = vector.broadcast %26 : vector<1x1xf32> to vector<1x8xf32>
    %28 = arith.cmpf oge, %24, %27 : vector<1x8xf32>
    %cst_25 = arith.constant -1.000000e+00 : f32
    %29 = vector.broadcast %cst_25 : f32 to vector<1x8xf32>
    %30 = arith.select %28, %23, %29 : vector<1x8xi1>, vector<1x8xf32>
    %cst_26 = arith.constant dense<0xFF800000> : vector<1xf32>
    %31 = vector.multi_reduction <maximumf>, %30, %cst_26 [1] : vector<1x8xf32> to vector<1xf32>
    %32 = vector.shape_cast %31 : vector<1xf32> to vector<1x1xf32>
    %cst_27 = arith.constant dense<0xFF800000> : vector<1xf32>
    %33 = vector.multi_reduction <maximumf>, %20, %cst_27 [1] : vector<1x8xf32> to vector<1xf32>
    %34 = vector.shape_cast %33 : vector<1xf32> to vector<1x1xf32>
    %35 = vector.broadcast %34 : vector<1x1xf32> to vector<1x8xf32>
    %36 = arith.subf %20, %35 : vector<1x8xf32>
    %37 = math.exp %36 : vector<1x8xf32>
    %cst_28 = arith.constant dense<0.000000e+00> : vector<1xf32>
    %38 = vector.multi_reduction <add>, %37, %cst_28 [1] : vector<1x8xf32> to vector<1xf32>
    %39 = vector.shape_cast %38 : vector<1xf32> to vector<1x1xf32>
    %40 = math.log %39 : vector<1x1xf32>
    %41 = arith.addf %40, %34 : vector<1x1xf32>
    %42 = vector.broadcast %32 : vector<1x1xf32> to vector<1x8xf32>
    %43 = arith.cmpf oeq, %23, %42 : vector<1x8xf32>
    %cst_29 = arith.constant 0.000000e+00 : f32
    %44 = vector.broadcast %cst_29 : f32 to vector<1x8xf32>
    %45 = arith.select %43, %20, %44 : vector<1x8xi1>, vector<1x8xf32>
    %cst_30 = arith.constant dense<0.000000e+00> : vector<1xf32>
    %46 = vector.multi_reduction <add>, %45, %cst_30 [1] : vector<1x8xf32> to vector<1xf32>
    %47 = vector.shape_cast %46 : vector<1xf32> to vector<1x1xf32>
    %48 = arith.subf %47, %41 : vector<1x1xf32>
    %c0_31 = arith.constant 0 : index
    %c0_32 = arith.constant 0 : index
    %49 = vector.load %arg22[%c0_31, %c0_32] : memref<1x6xf32, #tpu.memory_space<vmem>>, vector<1x6xf32>
    %c0_33 = arith.constant 0 : index
    %c0_34 = arith.constant 0 : index
    %50 = vector.load %arg9[%c0_33, %c0_34] : memref<1x8xf32, #tpu.memory_space<vmem>>, vector<1x8xf32>
    %51 = arith.mulf %4, %50 : vector<1x8xf32>
    %cst_35 = arith.constant dense<0.000000e+00> : vector<1xf32>
    %52 = vector.multi_reduction <add>, %51, %cst_35 [1] : vector<1x8xf32> to vector<1xf32>
    %53 = vector.shape_cast %52 : vector<1xf32> to vector<1x1xf32>
    %c0_36 = arith.constant 0 : index
    %c0_37 = arith.constant 0 : index
    %54 = vector.load %arg10[%c0_36, %c0_37] : memref<1x1xf32, #tpu.memory_space<vmem>>, vector<1x1xf32>
    %55 = arith.mulf %32, %54 : vector<1x1xf32>
    %56 = arith.addf %53, %55 : vector<1x1xf32>
    %c0_38 = arith.constant 0 : index
    %c0_39 = arith.constant 0 : index
    %57 = vector.load %arg11[%c0_38, %c0_39] : memref<1x1xf32, #tpu.memory_space<vmem>>, vector<1x1xf32>
    %58 = arith.addf %56, %57 : vector<1x1xf32>
    %59 = vector.extract_strided_slice %49 {offsets = [0, 0], sizes = [1, 1], strides = [1, 1]} : vector<1x6xf32> to vector<1x1xf32>
    %cst_40 = arith.constant 1.000000e-01 : f32
    %60 = vector.broadcast %cst_40 : f32 to vector<1x1xf32>
    %61 = arith.mulf %60, %59 : vector<1x1xf32>
    %62 = arith.addf %58, %61 : vector<1x1xf32>
    %63 = arith.subf %62, %58 : vector<1x1xf32>
    %64 = arith.mulf %63, %63 : vector<1x1xf32>
    %cst_41 = arith.constant 0.000000e+00 : f32
    %65 = vector.broadcast %cst_41 : f32 to vector<1x1xf32>
    %66 = arith.subf %65, %64 : vector<1x1xf32>
    %cst_42 = arith.constant 2.000000e-02 : f32
    %67 = vector.broadcast %cst_42 : f32 to vector<1x1xf32>
    %68 = arith.divf %66, %67 : vector<1x1xf32>
    %cst_43 = arith.constant -2.30258512 : f32
    %69 = vector.broadcast %cst_43 : f32 to vector<1x1xf32>
    %70 = arith.subf %68, %69 : vector<1x1xf32>
    %cst_44 = arith.constant 0.918938517 : f32
    %71 = vector.broadcast %cst_44 : f32 to vector<1x1xf32>
    %72 = arith.subf %70, %71 : vector<1x1xf32>
    %73 = arith.addf %48, %72 : vector<1x1xf32>
    %c0_45 = arith.constant 0 : index
    %c0_46 = arith.constant 0 : index
    %74 = vector.load %arg12[%c0_45, %c0_46] : memref<8x16xf32, #tpu.memory_space<vmem>>, vector<8x16xf32>
    %cst_47 = arith.constant dense<0.000000e+00> : vector<1x16xf32>
    %75 = tpu.matmul %4, %74, %cst_47 {dimension_numbers = #tpu.dot_dimension_numbers<[1], [0], [0], [1], [0, 0, 1, 1], [], []>} : vector<1x8xf32>, vector<8x16xf32>, vector<1x16xf32> -> vector<1x16xf32>
    %c0_48 = arith.constant 0 : index
    %c0_49 = arith.constant 0 : index
    %76 = vector.load %arg13[%c0_48, %c0_49] : memref<1x16xf32, #tpu.memory_space<vmem>>, vector<1x16xf32>
    %77 = vector.broadcast %32 : vector<1x1xf32> to vector<1x16xf32>
    %78 = arith.mulf %77, %76 : vector<1x16xf32>
    %79 = arith.addf %75, %78 : vector<1x16xf32>
    %c0_50 = arith.constant 0 : index
    %c0_51 = arith.constant 0 : index
    %80 = vector.load %arg14[%c0_50, %c0_51] : memref<1x16xf32, #tpu.memory_space<vmem>>, vector<1x16xf32>
    %81 = vector.broadcast %62 : vector<1x1xf32> to vector<1x16xf32>
    %82 = arith.mulf %81, %80 : vector<1x16xf32>
    %83 = arith.addf %79, %82 : vector<1x16xf32>
    %c0_52 = arith.constant 0 : index
    %c0_53 = arith.constant 0 : index
    %84 = vector.load %arg15[%c0_52, %c0_53] : memref<1x16xf32, #tpu.memory_space<vmem>>, vector<1x16xf32>
    %85 = arith.addf %83, %84 : vector<1x16xf32>
    %c0_54 = arith.constant 0 : index
    %c0_55 = arith.constant 0 : index
    %86 = vector.load %arg16[%c0_54, %c0_55] : memref<1x48xf32, #tpu.memory_space<vmem>>, vector<1x48xf32>
    %c0_56 = arith.constant 0 : index
    %c0_57 = arith.constant 0 : index
    %87 = vector.load %arg17[%c0_56, %c0_57] : memref<16x48xf32, #tpu.memory_space<vmem>>, vector<16x48xf32>
    %c0_58 = arith.constant 0 : index
    %c0_59 = arith.constant 0 : index
    %88 = vector.load %arg18[%c0_58, %c0_59] : memref<16x9xf32, #tpu.memory_space<vmem>>, vector<16x9xf32>
    %c0_60 = arith.constant 0 : index
    %c0_61 = arith.constant 0 : index
    %89 = vector.load %arg19[%c0_60, %c0_61] : memref<1x9xf32, #tpu.memory_space<vmem>>, vector<1x9xf32>
    %c0_62 = arith.constant 0 : index
    %c0_63 = arith.constant 0 : index
    %90 = vector.load %arg21[%c0_62, %c0_63] : memref<1x24xf32, #tpu.memory_space<vmem>>, vector<1x24xf32>
    %91 = tpu.iota {dimensions = array<i32: 1>} : vector<1x8xi32>
    %92 = arith.sitofp %91 : vector<1x8xi32> to vector<1x8xf32>
    %cst_64 = arith.constant 0.000000e+00 : f32
    %93 = vector.broadcast %cst_64 : f32 to vector<1x8xf32>
    %94 = arith.cmpf oeq, %92, %93 : vector<1x8xf32>
    %cst_65 = arith.constant 1.000000e+00 : f32
    %95 = vector.broadcast %cst_65 : f32 to vector<1x8xf32>
    %96 = arith.cmpf oeq, %92, %95 : vector<1x8xf32>
    %cst_66 = arith.constant 0.000000e+00 : f32
    %97 = vector.shape_cast %62 : vector<1x1xf32> to vector<1x1xf32>
    %98 = vector.broadcast %97 : vector<1x1xf32> to vector<1x8xf32>
    %99 = vector.broadcast %cst_66 : f32 to vector<1x8xf32>
    %100 = arith.select %96, %98, %99 : vector<1x8xi1>, vector<1x8xf32>
    %101 = vector.shape_cast %32 : vector<1x1xf32> to vector<1x1xf32>
    %102 = vector.broadcast %101 : vector<1x1xf32> to vector<1x8xf32>
    %103 = arith.select %94, %102, %100 : vector<1x8xi1>, vector<1x8xf32>
    %cst_67 = arith.constant 1.000000e+00 : f32
    %104 = vector.broadcast %cst_67 : f32 to vector<1x1xf32>
    %cst_68 = arith.constant 0.000000e+00 : f32
    %105 = vector.broadcast %cst_68 : f32 to vector<1x1xf32>
    %cst_69 = arith.constant dense<0.000000e+00> : vector<1x48xf32>
    %106 = tpu.matmul %85, %87, %cst_69 {dimension_numbers = #tpu.dot_dimension_numbers<[1], [0], [0], [1], [0, 0, 1, 1], [], []>} : vector<1x16xf32>, vector<16x48xf32>, vector<1x48xf32> -> vector<1x48xf32>
    %107 = vector.extract_strided_slice %86 {offsets = [0, 0], sizes = [1, 16], strides = [1, 1]} : vector<1x48xf32> to vector<1x16xf32>
    %108 = vector.extract_strided_slice %106 {offsets = [0, 0], sizes = [1, 16], strides = [1, 1]} : vector<1x48xf32> to vector<1x16xf32>
    %109 = arith.addf %107, %108 : vector<1x16xf32>
    %110 = arith.negf %109 : vector<1x16xf32>
    %111 = math.exp %110 : vector<1x16xf32>
    %cst_70 = arith.constant 1.000000e+00 : f32
    %112 = vector.broadcast %cst_70 : f32 to vector<1x16xf32>
    %113 = arith.addf %112, %111 : vector<1x16xf32>
    %114 = arith.divf %112, %113 : vector<1x16xf32>
    %115 = vector.extract_strided_slice %86 {offsets = [0, 16], sizes = [1, 16], strides = [1, 1]} : vector<1x48xf32> to vector<1x16xf32>
    %116 = vector.extract_strided_slice %106 {offsets = [0, 16], sizes = [1, 16], strides = [1, 1]} : vector<1x48xf32> to vector<1x16xf32>
    %117 = arith.addf %115, %116 : vector<1x16xf32>
    %118 = arith.negf %117 : vector<1x16xf32>
    %119 = math.exp %118 : vector<1x16xf32>
    %cst_71 = arith.constant 1.000000e+00 : f32
    %120 = vector.broadcast %cst_71 : f32 to vector<1x16xf32>
    %121 = arith.addf %120, %119 : vector<1x16xf32>
    %122 = arith.divf %120, %121 : vector<1x16xf32>
    %123 = vector.extract_strided_slice %86 {offsets = [0, 32], sizes = [1, 16], strides = [1, 1]} : vector<1x48xf32> to vector<1x16xf32>
    %124 = vector.extract_strided_slice %106 {offsets = [0, 32], sizes = [1, 16], strides = [1, 1]} : vector<1x48xf32> to vector<1x16xf32>
    %125 = arith.mulf %114, %124 : vector<1x16xf32>
    %126 = arith.addf %123, %125 : vector<1x16xf32>
    %127 = math.tanh %126 : vector<1x16xf32>
    %cst_72 = arith.constant 1.000000e+00 : f32
    %128 = vector.broadcast %cst_72 : f32 to vector<1x16xf32>
    %129 = arith.subf %128, %122 : vector<1x16xf32>
    %130 = arith.mulf %129, %127 : vector<1x16xf32>
    %131 = arith.mulf %122, %85 : vector<1x16xf32>
    %132 = arith.addf %130, %131 : vector<1x16xf32>
    %cst_73 = arith.constant dense<0.000000e+00> : vector<1x9xf32>
    %133 = tpu.matmul %132, %88, %cst_73 {dimension_numbers = #tpu.dot_dimension_numbers<[1], [0], [0], [1], [0, 0, 1, 1], [], []>} : vector<1x16xf32>, vector<16x9xf32>, vector<1x9xf32> -> vector<1x9xf32>
    %134 = arith.addf %133, %89 : vector<1x9xf32>
    %135 = vector.extract_strided_slice %134 {offsets = [0, 0], sizes = [1, 8], strides = [1, 1]} : vector<1x9xf32> to vector<1x8xf32>
    %136 = vector.extract_strided_slice %90 {offsets = [0, 0], sizes = [1, 8], strides = [1, 1]} : vector<1x24xf32> to vector<1x8xf32>
    %137 = tpu.iota {dimensions = array<i32: 1>} : vector<1x8xi32>
    %138 = arith.sitofp %137 : vector<1x8xi32> to vector<1x8xf32>
    %139 = arith.addf %135, %136 : vector<1x8xf32>
    %cst_74 = arith.constant dense<0xFF800000> : vector<1xf32>
    %140 = vector.multi_reduction <maximumf>, %139, %cst_74 [1] : vector<1x8xf32> to vector<1xf32>
    %141 = vector.shape_cast %140 : vector<1xf32> to vector<1x1xf32>
    %142 = vector.broadcast %141 : vector<1x1xf32> to vector<1x8xf32>
    %143 = arith.cmpf oge, %139, %142 : vector<1x8xf32>
    %cst_75 = arith.constant -1.000000e+00 : f32
    %144 = vector.broadcast %cst_75 : f32 to vector<1x8xf32>
    %145 = arith.select %143, %138, %144 : vector<1x8xi1>, vector<1x8xf32>
    %cst_76 = arith.constant dense<0xFF800000> : vector<1xf32>
    %146 = vector.multi_reduction <maximumf>, %145, %cst_76 [1] : vector<1x8xf32> to vector<1xf32>
    %147 = vector.shape_cast %146 : vector<1xf32> to vector<1x1xf32>
    %cst_77 = arith.constant dense<0xFF800000> : vector<1xf32>
    %148 = vector.multi_reduction <maximumf>, %135, %cst_77 [1] : vector<1x8xf32> to vector<1xf32>
    %149 = vector.shape_cast %148 : vector<1xf32> to vector<1x1xf32>
    %150 = vector.broadcast %149 : vector<1x1xf32> to vector<1x8xf32>
    %151 = arith.subf %135, %150 : vector<1x8xf32>
    %152 = math.exp %151 : vector<1x8xf32>
    %cst_78 = arith.constant dense<0.000000e+00> : vector<1xf32>
    %153 = vector.multi_reduction <add>, %152, %cst_78 [1] : vector<1x8xf32> to vector<1xf32>
    %154 = vector.shape_cast %153 : vector<1xf32> to vector<1x1xf32>
    %155 = math.log %154 : vector<1x1xf32>
    %156 = arith.addf %155, %149 : vector<1x1xf32>
    %157 = vector.broadcast %147 : vector<1x1xf32> to vector<1x8xf32>
    %158 = arith.cmpf oeq, %138, %157 : vector<1x8xf32>
    %cst_79 = arith.constant 0.000000e+00 : f32
    %159 = vector.broadcast %cst_79 : f32 to vector<1x8xf32>
    %160 = arith.select %158, %135, %159 : vector<1x8xi1>, vector<1x8xf32>
    %cst_80 = arith.constant dense<0.000000e+00> : vector<1xf32>
    %161 = vector.multi_reduction <add>, %160, %cst_80 [1] : vector<1x8xf32> to vector<1xf32>
    %162 = vector.shape_cast %161 : vector<1xf32> to vector<1x1xf32>
    %163 = arith.subf %162, %156 : vector<1x1xf32>
    %cst_81 = arith.constant 5.000000e+00 : f32
    %164 = vector.broadcast %cst_81 : f32 to vector<1x1xf32>
    %165 = arith.cmpf oeq, %147, %164 : vector<1x1xf32>
    %166 = arith.extui %165 : vector<1x1xi1> to vector<1x1xi32>
    %167 = arith.sitofp %166 : vector<1x1xi32> to vector<1x1xf32>
    %168 = arith.mulf %104, %163 : vector<1x1xf32>
    %169 = arith.addf %73, %168 : vector<1x1xf32>
    %170 = arith.addf %105, %104 : vector<1x1xf32>
    %cst_82 = arith.constant 2.000000e+00 : f32
    %171 = vector.broadcast %cst_82 : f32 to vector<1x8xf32>
    %172 = arith.cmpf oeq, %92, %171 : vector<1x8xf32>
    %cst_83 = arith.constant 0.000000e+00 : f32
    %173 = vector.broadcast %cst_83 : f32 to vector<1x1xf32>
    %174 = arith.cmpf ogt, %104, %173 : vector<1x1xf32>
    %175 = vector.broadcast %174 : vector<1x1xi1> to vector<1x8xi1>
    %176 = arith.andi %172, %175 : vector<1x8xi1>
    %177 = vector.shape_cast %147 : vector<1x1xf32> to vector<1x1xf32>
    %178 = vector.broadcast %177 : vector<1x1xf32> to vector<1x8xf32>
    %179 = arith.select %176, %178, %103 : vector<1x8xi1>, vector<1x8xf32>
    %cst_84 = arith.constant 1.000000e+00 : f32
    %180 = vector.broadcast %cst_84 : f32 to vector<1x1xf32>
    %181 = arith.subf %180, %167 : vector<1x1xf32>
    %182 = arith.mulf %104, %181 : vector<1x1xf32>
    %cst_85 = arith.constant dense<0.000000e+00> : vector<1x48xf32>
    %183 = tpu.matmul %132, %87, %cst_85 {dimension_numbers = #tpu.dot_dimension_numbers<[1], [0], [0], [1], [0, 0, 1, 1], [], []>} : vector<1x16xf32>, vector<16x48xf32>, vector<1x48xf32> -> vector<1x48xf32>
    %184 = vector.extract_strided_slice %86 {offsets = [0, 0], sizes = [1, 16], strides = [1, 1]} : vector<1x48xf32> to vector<1x16xf32>
    %185 = vector.extract_strided_slice %183 {offsets = [0, 0], sizes = [1, 16], strides = [1, 1]} : vector<1x48xf32> to vector<1x16xf32>
    %186 = arith.addf %184, %185 : vector<1x16xf32>
    %187 = arith.negf %186 : vector<1x16xf32>
    %188 = math.exp %187 : vector<1x16xf32>
    %cst_86 = arith.constant 1.000000e+00 : f32
    %189 = vector.broadcast %cst_86 : f32 to vector<1x16xf32>
    %190 = arith.addf %189, %188 : vector<1x16xf32>
    %191 = arith.divf %189, %190 : vector<1x16xf32>
    %192 = vector.extract_strided_slice %86 {offsets = [0, 16], sizes = [1, 16], strides = [1, 1]} : vector<1x48xf32> to vector<1x16xf32>
    %193 = vector.extract_strided_slice %183 {offsets = [0, 16], sizes = [1, 16], strides = [1, 1]} : vector<1x48xf32> to vector<1x16xf32>
    %194 = arith.addf %192, %193 : vector<1x16xf32>
    %195 = arith.negf %194 : vector<1x16xf32>
    %196 = math.exp %195 : vector<1x16xf32>
    %cst_87 = arith.constant 1.000000e+00 : f32
    %197 = vector.broadcast %cst_87 : f32 to vector<1x16xf32>
    %198 = arith.addf %197, %196 : vector<1x16xf32>
    %199 = arith.divf %197, %198 : vector<1x16xf32>
    %200 = vector.extract_strided_slice %86 {offsets = [0, 32], sizes = [1, 16], strides = [1, 1]} : vector<1x48xf32> to vector<1x16xf32>
    %201 = vector.extract_strided_slice %183 {offsets = [0, 32], sizes = [1, 16], strides = [1, 1]} : vector<1x48xf32> to vector<1x16xf32>
    %202 = arith.mulf %191, %201 : vector<1x16xf32>
    %203 = arith.addf %200, %202 : vector<1x16xf32>
    %204 = math.tanh %203 : vector<1x16xf32>
    %cst_88 = arith.constant 1.000000e+00 : f32
    %205 = vector.broadcast %cst_88 : f32 to vector<1x16xf32>
    %206 = arith.subf %205, %199 : vector<1x16xf32>
    %207 = arith.mulf %206, %204 : vector<1x16xf32>
    %208 = arith.mulf %199, %132 : vector<1x16xf32>
    %209 = arith.addf %207, %208 : vector<1x16xf32>
    %cst_89 = arith.constant dense<0.000000e+00> : vector<1x9xf32>
    %210 = tpu.matmul %209, %88, %cst_89 {dimension_numbers = #tpu.dot_dimension_numbers<[1], [0], [0], [1], [0, 0, 1, 1], [], []>} : vector<1x16xf32>, vector<16x9xf32>, vector<1x9xf32> -> vector<1x9xf32>
    %211 = arith.addf %210, %89 : vector<1x9xf32>
    %212 = vector.extract_strided_slice %211 {offsets = [0, 8], sizes = [1, 1], strides = [1, 1]} : vector<1x9xf32> to vector<1x1xf32>
    %213 = vector.extract_strided_slice %49 {offsets = [0, 1], sizes = [1, 1], strides = [1, 1]} : vector<1x6xf32> to vector<1x1xf32>
    %cst_90 = arith.constant 1.000000e-01 : f32
    %214 = vector.broadcast %cst_90 : f32 to vector<1x1xf32>
    %215 = arith.mulf %214, %213 : vector<1x1xf32>
    %216 = arith.addf %212, %215 : vector<1x1xf32>
    %217 = arith.subf %216, %212 : vector<1x1xf32>
    %218 = arith.mulf %217, %217 : vector<1x1xf32>
    %cst_91 = arith.constant 0.000000e+00 : f32
    %219 = vector.broadcast %cst_91 : f32 to vector<1x1xf32>
    %220 = arith.subf %219, %218 : vector<1x1xf32>
    %cst_92 = arith.constant 2.000000e-02 : f32
    %221 = vector.broadcast %cst_92 : f32 to vector<1x1xf32>
    %222 = arith.divf %220, %221 : vector<1x1xf32>
    %cst_93 = arith.constant -2.30258512 : f32
    %223 = vector.broadcast %cst_93 : f32 to vector<1x1xf32>
    %224 = arith.subf %222, %223 : vector<1x1xf32>
    %cst_94 = arith.constant 0.918938517 : f32
    %225 = vector.broadcast %cst_94 : f32 to vector<1x1xf32>
    %226 = arith.subf %224, %225 : vector<1x1xf32>
    %cst_95 = arith.constant 0.000000e+00 : f32
    %227 = vector.broadcast %cst_95 : f32 to vector<1x1xf32>
    %228 = arith.mulf %182, %226 : vector<1x1xf32>
    %229 = arith.addf %169, %228 : vector<1x1xf32>
    %230 = arith.addf %170, %182 : vector<1x1xf32>
    %cst_96 = arith.constant 3.000000e+00 : f32
    %231 = vector.broadcast %cst_96 : f32 to vector<1x8xf32>
    %232 = arith.cmpf oeq, %92, %231 : vector<1x8xf32>
    %cst_97 = arith.constant 0.000000e+00 : f32
    %233 = vector.broadcast %cst_97 : f32 to vector<1x1xf32>
    %234 = arith.cmpf ogt, %182, %233 : vector<1x1xf32>
    %235 = vector.broadcast %234 : vector<1x1xi1> to vector<1x8xi1>
    %236 = arith.andi %232, %235 : vector<1x8xi1>
    %237 = vector.shape_cast %216 : vector<1x1xf32> to vector<1x1xf32>
    %238 = vector.broadcast %237 : vector<1x1xf32> to vector<1x8xf32>
    %239 = arith.select %236, %238, %179 : vector<1x8xi1>, vector<1x8xf32>
    %cst_98 = arith.constant 1.000000e+00 : f32
    %240 = vector.broadcast %cst_98 : f32 to vector<1x1xf32>
    %241 = arith.subf %240, %227 : vector<1x1xf32>
    %242 = arith.mulf %182, %241 : vector<1x1xf32>
    %cst_99 = arith.constant dense<0.000000e+00> : vector<1x48xf32>
    %243 = tpu.matmul %209, %87, %cst_99 {dimension_numbers = #tpu.dot_dimension_numbers<[1], [0], [0], [1], [0, 0, 1, 1], [], []>} : vector<1x16xf32>, vector<16x48xf32>, vector<1x48xf32> -> vector<1x48xf32>
    %244 = vector.extract_strided_slice %86 {offsets = [0, 0], sizes = [1, 16], strides = [1, 1]} : vector<1x48xf32> to vector<1x16xf32>
    %245 = vector.extract_strided_slice %243 {offsets = [0, 0], sizes = [1, 16], strides = [1, 1]} : vector<1x48xf32> to vector<1x16xf32>
    %246 = arith.addf %244, %245 : vector<1x16xf32>
    %247 = arith.negf %246 : vector<1x16xf32>
    %248 = math.exp %247 : vector<1x16xf32>
    %cst_100 = arith.constant 1.000000e+00 : f32
    %249 = vector.broadcast %cst_100 : f32 to vector<1x16xf32>
    %250 = arith.addf %249, %248 : vector<1x16xf32>
    %251 = arith.divf %249, %250 : vector<1x16xf32>
    %252 = vector.extract_strided_slice %86 {offsets = [0, 16], sizes = [1, 16], strides = [1, 1]} : vector<1x48xf32> to vector<1x16xf32>
    %253 = vector.extract_strided_slice %243 {offsets = [0, 16], sizes = [1, 16], strides = [1, 1]} : vector<1x48xf32> to vector<1x16xf32>
    %254 = arith.addf %252, %253 : vector<1x16xf32>
    %255 = arith.negf %254 : vector<1x16xf32>
    %256 = math.exp %255 : vector<1x16xf32>
    %cst_101 = arith.constant 1.000000e+00 : f32
    %257 = vector.broadcast %cst_101 : f32 to vector<1x16xf32>
    %258 = arith.addf %257, %256 : vector<1x16xf32>
    %259 = arith.divf %257, %258 : vector<1x16xf32>
    %260 = vector.extract_strided_slice %86 {offsets = [0, 32], sizes = [1, 16], strides = [1, 1]} : vector<1x48xf32> to vector<1x16xf32>
    %261 = vector.extract_strided_slice %243 {offsets = [0, 32], sizes = [1, 16], strides = [1, 1]} : vector<1x48xf32> to vector<1x16xf32>
    %262 = arith.mulf %251, %261 : vector<1x16xf32>
    %263 = arith.addf %260, %262 : vector<1x16xf32>
    %264 = math.tanh %263 : vector<1x16xf32>
    %cst_102 = arith.constant 1.000000e+00 : f32
    %265 = vector.broadcast %cst_102 : f32 to vector<1x16xf32>
    %266 = arith.subf %265, %259 : vector<1x16xf32>
    %267 = arith.mulf %266, %264 : vector<1x16xf32>
    %268 = arith.mulf %259, %209 : vector<1x16xf32>
    %269 = arith.addf %267, %268 : vector<1x16xf32>
    %cst_103 = arith.constant dense<0.000000e+00> : vector<1x9xf32>
    %270 = tpu.matmul %269, %88, %cst_103 {dimension_numbers = #tpu.dot_dimension_numbers<[1], [0], [0], [1], [0, 0, 1, 1], [], []>} : vector<1x16xf32>, vector<16x9xf32>, vector<1x9xf32> -> vector<1x9xf32>
    %271 = arith.addf %270, %89 : vector<1x9xf32>
    %272 = vector.extract_strided_slice %271 {offsets = [0, 0], sizes = [1, 8], strides = [1, 1]} : vector<1x9xf32> to vector<1x8xf32>
    %273 = vector.extract_strided_slice %90 {offsets = [0, 8], sizes = [1, 8], strides = [1, 1]} : vector<1x24xf32> to vector<1x8xf32>
    %274 = tpu.iota {dimensions = array<i32: 1>} : vector<1x8xi32>
    %275 = arith.sitofp %274 : vector<1x8xi32> to vector<1x8xf32>
    %276 = arith.addf %272, %273 : vector<1x8xf32>
    %cst_104 = arith.constant dense<0xFF800000> : vector<1xf32>
    %277 = vector.multi_reduction <maximumf>, %276, %cst_104 [1] : vector<1x8xf32> to vector<1xf32>
    %278 = vector.shape_cast %277 : vector<1xf32> to vector<1x1xf32>
    %279 = vector.broadcast %278 : vector<1x1xf32> to vector<1x8xf32>
    %280 = arith.cmpf oge, %276, %279 : vector<1x8xf32>
    %cst_105 = arith.constant -1.000000e+00 : f32
    %281 = vector.broadcast %cst_105 : f32 to vector<1x8xf32>
    %282 = arith.select %280, %275, %281 : vector<1x8xi1>, vector<1x8xf32>
    %cst_106 = arith.constant dense<0xFF800000> : vector<1xf32>
    %283 = vector.multi_reduction <maximumf>, %282, %cst_106 [1] : vector<1x8xf32> to vector<1xf32>
    %284 = vector.shape_cast %283 : vector<1xf32> to vector<1x1xf32>
    %cst_107 = arith.constant dense<0xFF800000> : vector<1xf32>
    %285 = vector.multi_reduction <maximumf>, %272, %cst_107 [1] : vector<1x8xf32> to vector<1xf32>
    %286 = vector.shape_cast %285 : vector<1xf32> to vector<1x1xf32>
    %287 = vector.broadcast %286 : vector<1x1xf32> to vector<1x8xf32>
    %288 = arith.subf %272, %287 : vector<1x8xf32>
    %289 = math.exp %288 : vector<1x8xf32>
    %cst_108 = arith.constant dense<0.000000e+00> : vector<1xf32>
    %290 = vector.multi_reduction <add>, %289, %cst_108 [1] : vector<1x8xf32> to vector<1xf32>
    %291 = vector.shape_cast %290 : vector<1xf32> to vector<1x1xf32>
    %292 = math.log %291 : vector<1x1xf32>
    %293 = arith.addf %292, %286 : vector<1x1xf32>
    %294 = vector.broadcast %284 : vector<1x1xf32> to vector<1x8xf32>
    %295 = arith.cmpf oeq, %275, %294 : vector<1x8xf32>
    %cst_109 = arith.constant 0.000000e+00 : f32
    %296 = vector.broadcast %cst_109 : f32 to vector<1x8xf32>
    %297 = arith.select %295, %272, %296 : vector<1x8xi1>, vector<1x8xf32>
    %cst_110 = arith.constant dense<0.000000e+00> : vector<1xf32>
    %298 = vector.multi_reduction <add>, %297, %cst_110 [1] : vector<1x8xf32> to vector<1xf32>
    %299 = vector.shape_cast %298 : vector<1xf32> to vector<1x1xf32>
    %300 = arith.subf %299, %293 : vector<1x1xf32>
    %cst_111 = arith.constant 5.000000e+00 : f32
    %301 = vector.broadcast %cst_111 : f32 to vector<1x1xf32>
    %302 = arith.cmpf oeq, %284, %301 : vector<1x1xf32>
    %303 = arith.extui %302 : vector<1x1xi1> to vector<1x1xi32>
    %304 = arith.sitofp %303 : vector<1x1xi32> to vector<1x1xf32>
    %305 = arith.mulf %242, %300 : vector<1x1xf32>
    %306 = arith.addf %229, %305 : vector<1x1xf32>
    %307 = arith.addf %230, %242 : vector<1x1xf32>
    %cst_112 = arith.constant 4.000000e+00 : f32
    %308 = vector.broadcast %cst_112 : f32 to vector<1x8xf32>
    %309 = arith.cmpf oeq, %92, %308 : vector<1x8xf32>
    %cst_113 = arith.constant 0.000000e+00 : f32
    %310 = vector.broadcast %cst_113 : f32 to vector<1x1xf32>
    %311 = arith.cmpf ogt, %242, %310 : vector<1x1xf32>
    %312 = vector.broadcast %311 : vector<1x1xi1> to vector<1x8xi1>
    %313 = arith.andi %309, %312 : vector<1x8xi1>
    %314 = vector.shape_cast %284 : vector<1x1xf32> to vector<1x1xf32>
    %315 = vector.broadcast %314 : vector<1x1xf32> to vector<1x8xf32>
    %316 = arith.select %313, %315, %239 : vector<1x8xi1>, vector<1x8xf32>
    %cst_114 = arith.constant 1.000000e+00 : f32
    %317 = vector.broadcast %cst_114 : f32 to vector<1x1xf32>
    %318 = arith.subf %317, %304 : vector<1x1xf32>
    %319 = arith.mulf %242, %318 : vector<1x1xf32>
    %cst_115 = arith.constant dense<0.000000e+00> : vector<1x48xf32>
    %320 = tpu.matmul %269, %87, %cst_115 {dimension_numbers = #tpu.dot_dimension_numbers<[1], [0], [0], [1], [0, 0, 1, 1], [], []>} : vector<1x16xf32>, vector<16x48xf32>, vector<1x48xf32> -> vector<1x48xf32>
    %321 = vector.extract_strided_slice %86 {offsets = [0, 0], sizes = [1, 16], strides = [1, 1]} : vector<1x48xf32> to vector<1x16xf32>
    %322 = vector.extract_strided_slice %320 {offsets = [0, 0], sizes = [1, 16], strides = [1, 1]} : vector<1x48xf32> to vector<1x16xf32>
    %323 = arith.addf %321, %322 : vector<1x16xf32>
    %324 = arith.negf %323 : vector<1x16xf32>
    %325 = math.exp %324 : vector<1x16xf32>
    %cst_116 = arith.constant 1.000000e+00 : f32
    %326 = vector.broadcast %cst_116 : f32 to vector<1x16xf32>
    %327 = arith.addf %326, %325 : vector<1x16xf32>
    %328 = arith.divf %326, %327 : vector<1x16xf32>
    %329 = vector.extract_strided_slice %86 {offsets = [0, 16], sizes = [1, 16], strides = [1, 1]} : vector<1x48xf32> to vector<1x16xf32>
    %330 = vector.extract_strided_slice %320 {offsets = [0, 16], sizes = [1, 16], strides = [1, 1]} : vector<1x48xf32> to vector<1x16xf32>
    %331 = arith.addf %329, %330 : vector<1x16xf32>
    %332 = arith.negf %331 : vector<1x16xf32>
    %333 = math.exp %332 : vector<1x16xf32>
    %cst_117 = arith.constant 1.000000e+00 : f32
    %334 = vector.broadcast %cst_117 : f32 to vector<1x16xf32>
    %335 = arith.addf %334, %333 : vector<1x16xf32>
    %336 = arith.divf %334, %335 : vector<1x16xf32>
    %337 = vector.extract_strided_slice %86 {offsets = [0, 32], sizes = [1, 16], strides = [1, 1]} : vector<1x48xf32> to vector<1x16xf32>
    %338 = vector.extract_strided_slice %320 {offsets = [0, 32], sizes = [1, 16], strides = [1, 1]} : vector<1x48xf32> to vector<1x16xf32>
    %339 = arith.mulf %328, %338 : vector<1x16xf32>
    %340 = arith.addf %337, %339 : vector<1x16xf32>
    %341 = math.tanh %340 : vector<1x16xf32>
    %cst_118 = arith.constant 1.000000e+00 : f32
    %342 = vector.broadcast %cst_118 : f32 to vector<1x16xf32>
    %343 = arith.subf %342, %336 : vector<1x16xf32>
    %344 = arith.mulf %343, %341 : vector<1x16xf32>
    %345 = arith.mulf %336, %269 : vector<1x16xf32>
    %346 = arith.addf %344, %345 : vector<1x16xf32>
    %cst_119 = arith.constant dense<0.000000e+00> : vector<1x9xf32>
    %347 = tpu.matmul %346, %88, %cst_119 {dimension_numbers = #tpu.dot_dimension_numbers<[1], [0], [0], [1], [0, 0, 1, 1], [], []>} : vector<1x16xf32>, vector<16x9xf32>, vector<1x9xf32> -> vector<1x9xf32>
    %348 = arith.addf %347, %89 : vector<1x9xf32>
    %349 = vector.extract_strided_slice %348 {offsets = [0, 8], sizes = [1, 1], strides = [1, 1]} : vector<1x9xf32> to vector<1x1xf32>
    %350 = vector.extract_strided_slice %49 {offsets = [0, 3], sizes = [1, 1], strides = [1, 1]} : vector<1x6xf32> to vector<1x1xf32>
    %cst_120 = arith.constant 1.000000e-01 : f32
    %351 = vector.broadcast %cst_120 : f32 to vector<1x1xf32>
    %352 = arith.mulf %351, %350 : vector<1x1xf32>
    %353 = arith.addf %349, %352 : vector<1x1xf32>
    %354 = arith.subf %353, %349 : vector<1x1xf32>
    %355 = arith.mulf %354, %354 : vector<1x1xf32>
    %cst_121 = arith.constant 0.000000e+00 : f32
    %356 = vector.broadcast %cst_121 : f32 to vector<1x1xf32>
    %357 = arith.subf %356, %355 : vector<1x1xf32>
    %cst_122 = arith.constant 2.000000e-02 : f32
    %358 = vector.broadcast %cst_122 : f32 to vector<1x1xf32>
    %359 = arith.divf %357, %358 : vector<1x1xf32>
    %cst_123 = arith.constant -2.30258512 : f32
    %360 = vector.broadcast %cst_123 : f32 to vector<1x1xf32>
    %361 = arith.subf %359, %360 : vector<1x1xf32>
    %cst_124 = arith.constant 0.918938517 : f32
    %362 = vector.broadcast %cst_124 : f32 to vector<1x1xf32>
    %363 = arith.subf %361, %362 : vector<1x1xf32>
    %cst_125 = arith.constant 0.000000e+00 : f32
    %364 = vector.broadcast %cst_125 : f32 to vector<1x1xf32>
    %365 = arith.mulf %319, %363 : vector<1x1xf32>
    %366 = arith.addf %306, %365 : vector<1x1xf32>
    %367 = arith.addf %307, %319 : vector<1x1xf32>
    %cst_126 = arith.constant 5.000000e+00 : f32
    %368 = vector.broadcast %cst_126 : f32 to vector<1x8xf32>
    %369 = arith.cmpf oeq, %92, %368 : vector<1x8xf32>
    %cst_127 = arith.constant 0.000000e+00 : f32
    %370 = vector.broadcast %cst_127 : f32 to vector<1x1xf32>
    %371 = arith.cmpf ogt, %319, %370 : vector<1x1xf32>
    %372 = vector.broadcast %371 : vector<1x1xi1> to vector<1x8xi1>
    %373 = arith.andi %369, %372 : vector<1x8xi1>
    %374 = vector.shape_cast %353 : vector<1x1xf32> to vector<1x1xf32>
    %375 = vector.broadcast %374 : vector<1x1xf32> to vector<1x8xf32>
    %376 = arith.select %373, %375, %316 : vector<1x8xi1>, vector<1x8xf32>
    %cst_128 = arith.constant 1.000000e+00 : f32
    %377 = vector.broadcast %cst_128 : f32 to vector<1x1xf32>
    %378 = arith.subf %377, %364 : vector<1x1xf32>
    %379 = arith.mulf %319, %378 : vector<1x1xf32>
    %cst_129 = arith.constant dense<0.000000e+00> : vector<1x48xf32>
    %380 = tpu.matmul %346, %87, %cst_129 {dimension_numbers = #tpu.dot_dimension_numbers<[1], [0], [0], [1], [0, 0, 1, 1], [], []>} : vector<1x16xf32>, vector<16x48xf32>, vector<1x48xf32> -> vector<1x48xf32>
    %381 = vector.extract_strided_slice %86 {offsets = [0, 0], sizes = [1, 16], strides = [1, 1]} : vector<1x48xf32> to vector<1x16xf32>
    %382 = vector.extract_strided_slice %380 {offsets = [0, 0], sizes = [1, 16], strides = [1, 1]} : vector<1x48xf32> to vector<1x16xf32>
    %383 = arith.addf %381, %382 : vector<1x16xf32>
    %384 = arith.negf %383 : vector<1x16xf32>
    %385 = math.exp %384 : vector<1x16xf32>
    %cst_130 = arith.constant 1.000000e+00 : f32
    %386 = vector.broadcast %cst_130 : f32 to vector<1x16xf32>
    %387 = arith.addf %386, %385 : vector<1x16xf32>
    %388 = arith.divf %386, %387 : vector<1x16xf32>
    %389 = vector.extract_strided_slice %86 {offsets = [0, 16], sizes = [1, 16], strides = [1, 1]} : vector<1x48xf32> to vector<1x16xf32>
    %390 = vector.extract_strided_slice %380 {offsets = [0, 16], sizes = [1, 16], strides = [1, 1]} : vector<1x48xf32> to vector<1x16xf32>
    %391 = arith.addf %389, %390 : vector<1x16xf32>
    %392 = arith.negf %391 : vector<1x16xf32>
    %393 = math.exp %392 : vector<1x16xf32>
    %cst_131 = arith.constant 1.000000e+00 : f32
    %394 = vector.broadcast %cst_131 : f32 to vector<1x16xf32>
    %395 = arith.addf %394, %393 : vector<1x16xf32>
    %396 = arith.divf %394, %395 : vector<1x16xf32>
    %397 = vector.extract_strided_slice %86 {offsets = [0, 32], sizes = [1, 16], strides = [1, 1]} : vector<1x48xf32> to vector<1x16xf32>
    %398 = vector.extract_strided_slice %380 {offsets = [0, 32], sizes = [1, 16], strides = [1, 1]} : vector<1x48xf32> to vector<1x16xf32>
    %399 = arith.mulf %388, %398 : vector<1x16xf32>
    %400 = arith.addf %397, %399 : vector<1x16xf32>
    %401 = math.tanh %400 : vector<1x16xf32>
    %cst_132 = arith.constant 1.000000e+00 : f32
    %402 = vector.broadcast %cst_132 : f32 to vector<1x16xf32>
    %403 = arith.subf %402, %396 : vector<1x16xf32>
    %404 = arith.mulf %403, %401 : vector<1x16xf32>
    %405 = arith.mulf %396, %346 : vector<1x16xf32>
    %406 = arith.addf %404, %405 : vector<1x16xf32>
    %cst_133 = arith.constant dense<0.000000e+00> : vector<1x9xf32>
    %407 = tpu.matmul %406, %88, %cst_133 {dimension_numbers = #tpu.dot_dimension_numbers<[1], [0], [0], [1], [0, 0, 1, 1], [], []>} : vector<1x16xf32>, vector<16x9xf32>, vector<1x9xf32> -> vector<1x9xf32>
    %408 = arith.addf %407, %89 : vector<1x9xf32>
    %409 = vector.extract_strided_slice %408 {offsets = [0, 0], sizes = [1, 8], strides = [1, 1]} : vector<1x9xf32> to vector<1x8xf32>
    %410 = vector.extract_strided_slice %90 {offsets = [0, 16], sizes = [1, 8], strides = [1, 1]} : vector<1x24xf32> to vector<1x8xf32>
    %411 = tpu.iota {dimensions = array<i32: 1>} : vector<1x8xi32>
    %412 = arith.sitofp %411 : vector<1x8xi32> to vector<1x8xf32>
    %413 = arith.addf %409, %410 : vector<1x8xf32>
    %cst_134 = arith.constant dense<0xFF800000> : vector<1xf32>
    %414 = vector.multi_reduction <maximumf>, %413, %cst_134 [1] : vector<1x8xf32> to vector<1xf32>
    %415 = vector.shape_cast %414 : vector<1xf32> to vector<1x1xf32>
    %416 = vector.broadcast %415 : vector<1x1xf32> to vector<1x8xf32>
    %417 = arith.cmpf oge, %413, %416 : vector<1x8xf32>
    %cst_135 = arith.constant -1.000000e+00 : f32
    %418 = vector.broadcast %cst_135 : f32 to vector<1x8xf32>
    %419 = arith.select %417, %412, %418 : vector<1x8xi1>, vector<1x8xf32>
    %cst_136 = arith.constant dense<0xFF800000> : vector<1xf32>
    %420 = vector.multi_reduction <maximumf>, %419, %cst_136 [1] : vector<1x8xf32> to vector<1xf32>
    %421 = vector.shape_cast %420 : vector<1xf32> to vector<1x1xf32>
    %cst_137 = arith.constant dense<0xFF800000> : vector<1xf32>
    %422 = vector.multi_reduction <maximumf>, %409, %cst_137 [1] : vector<1x8xf32> to vector<1xf32>
    %423 = vector.shape_cast %422 : vector<1xf32> to vector<1x1xf32>
    %424 = vector.broadcast %423 : vector<1x1xf32> to vector<1x8xf32>
    %425 = arith.subf %409, %424 : vector<1x8xf32>
    %426 = math.exp %425 : vector<1x8xf32>
    %cst_138 = arith.constant dense<0.000000e+00> : vector<1xf32>
    %427 = vector.multi_reduction <add>, %426, %cst_138 [1] : vector<1x8xf32> to vector<1xf32>
    %428 = vector.shape_cast %427 : vector<1xf32> to vector<1x1xf32>
    %429 = math.log %428 : vector<1x1xf32>
    %430 = arith.addf %429, %423 : vector<1x1xf32>
    %431 = vector.broadcast %421 : vector<1x1xf32> to vector<1x8xf32>
    %432 = arith.cmpf oeq, %412, %431 : vector<1x8xf32>
    %cst_139 = arith.constant 0.000000e+00 : f32
    %433 = vector.broadcast %cst_139 : f32 to vector<1x8xf32>
    %434 = arith.select %432, %409, %433 : vector<1x8xi1>, vector<1x8xf32>
    %cst_140 = arith.constant dense<0.000000e+00> : vector<1xf32>
    %435 = vector.multi_reduction <add>, %434, %cst_140 [1] : vector<1x8xf32> to vector<1xf32>
    %436 = vector.shape_cast %435 : vector<1xf32> to vector<1x1xf32>
    %437 = arith.subf %436, %430 : vector<1x1xf32>
    %cst_141 = arith.constant 5.000000e+00 : f32
    %438 = vector.broadcast %cst_141 : f32 to vector<1x1xf32>
    %439 = arith.cmpf oeq, %421, %438 : vector<1x1xf32>
    %440 = arith.extui %439 : vector<1x1xi1> to vector<1x1xi32>
    %441 = arith.sitofp %440 : vector<1x1xi32> to vector<1x1xf32>
    %442 = arith.mulf %379, %437 : vector<1x1xf32>
    %443 = arith.addf %366, %442 : vector<1x1xf32>
    %444 = arith.addf %367, %379 : vector<1x1xf32>
    %cst_142 = arith.constant 6.000000e+00 : f32
    %445 = vector.broadcast %cst_142 : f32 to vector<1x8xf32>
    %446 = arith.cmpf oeq, %92, %445 : vector<1x8xf32>
    %cst_143 = arith.constant 0.000000e+00 : f32
    %447 = vector.broadcast %cst_143 : f32 to vector<1x1xf32>
    %448 = arith.cmpf ogt, %379, %447 : vector<1x1xf32>
    %449 = vector.broadcast %448 : vector<1x1xi1> to vector<1x8xi1>
    %450 = arith.andi %446, %449 : vector<1x8xi1>
    %451 = vector.shape_cast %421 : vector<1x1xf32> to vector<1x1xf32>
    %452 = vector.broadcast %451 : vector<1x1xf32> to vector<1x8xf32>
    %453 = arith.select %450, %452, %376 : vector<1x8xi1>, vector<1x8xf32>
    %cst_144 = arith.constant 1.000000e+00 : f32
    %454 = vector.broadcast %cst_144 : f32 to vector<1x1xf32>
    %455 = arith.subf %454, %441 : vector<1x1xf32>
    %456 = arith.mulf %379, %455 : vector<1x1xf32>
    %cst_145 = arith.constant dense<0.000000e+00> : vector<1x48xf32>
    %457 = tpu.matmul %406, %87, %cst_145 {dimension_numbers = #tpu.dot_dimension_numbers<[1], [0], [0], [1], [0, 0, 1, 1], [], []>} : vector<1x16xf32>, vector<16x48xf32>, vector<1x48xf32> -> vector<1x48xf32>
    %458 = vector.extract_strided_slice %86 {offsets = [0, 0], sizes = [1, 16], strides = [1, 1]} : vector<1x48xf32> to vector<1x16xf32>
    %459 = vector.extract_strided_slice %457 {offsets = [0, 0], sizes = [1, 16], strides = [1, 1]} : vector<1x48xf32> to vector<1x16xf32>
    %460 = arith.addf %458, %459 : vector<1x16xf32>
    %461 = arith.negf %460 : vector<1x16xf32>
    %462 = math.exp %461 : vector<1x16xf32>
    %cst_146 = arith.constant 1.000000e+00 : f32
    %463 = vector.broadcast %cst_146 : f32 to vector<1x16xf32>
    %464 = arith.addf %463, %462 : vector<1x16xf32>
    %465 = arith.divf %463, %464 : vector<1x16xf32>
    %466 = vector.extract_strided_slice %86 {offsets = [0, 16], sizes = [1, 16], strides = [1, 1]} : vector<1x48xf32> to vector<1x16xf32>
    %467 = vector.extract_strided_slice %457 {offsets = [0, 16], sizes = [1, 16], strides = [1, 1]} : vector<1x48xf32> to vector<1x16xf32>
    %468 = arith.addf %466, %467 : vector<1x16xf32>
    %469 = arith.negf %468 : vector<1x16xf32>
    %470 = math.exp %469 : vector<1x16xf32>
    %cst_147 = arith.constant 1.000000e+00 : f32
    %471 = vector.broadcast %cst_147 : f32 to vector<1x16xf32>
    %472 = arith.addf %471, %470 : vector<1x16xf32>
    %473 = arith.divf %471, %472 : vector<1x16xf32>
    %474 = vector.extract_strided_slice %86 {offsets = [0, 32], sizes = [1, 16], strides = [1, 1]} : vector<1x48xf32> to vector<1x16xf32>
    %475 = vector.extract_strided_slice %457 {offsets = [0, 32], sizes = [1, 16], strides = [1, 1]} : vector<1x48xf32> to vector<1x16xf32>
    %476 = arith.mulf %465, %475 : vector<1x16xf32>
    %477 = arith.addf %474, %476 : vector<1x16xf32>
    %478 = math.tanh %477 : vector<1x16xf32>
    %cst_148 = arith.constant 1.000000e+00 : f32
    %479 = vector.broadcast %cst_148 : f32 to vector<1x16xf32>
    %480 = arith.subf %479, %473 : vector<1x16xf32>
    %481 = arith.mulf %480, %478 : vector<1x16xf32>
    %482 = arith.mulf %473, %406 : vector<1x16xf32>
    %483 = arith.addf %481, %482 : vector<1x16xf32>
    %cst_149 = arith.constant dense<0.000000e+00> : vector<1x9xf32>
    %484 = tpu.matmul %483, %88, %cst_149 {dimension_numbers = #tpu.dot_dimension_numbers<[1], [0], [0], [1], [0, 0, 1, 1], [], []>} : vector<1x16xf32>, vector<16x9xf32>, vector<1x9xf32> -> vector<1x9xf32>
    %485 = arith.addf %484, %89 : vector<1x9xf32>
    %486 = vector.extract_strided_slice %485 {offsets = [0, 8], sizes = [1, 1], strides = [1, 1]} : vector<1x9xf32> to vector<1x1xf32>
    %487 = vector.extract_strided_slice %49 {offsets = [0, 5], sizes = [1, 1], strides = [1, 1]} : vector<1x6xf32> to vector<1x1xf32>
    %cst_150 = arith.constant 1.000000e-01 : f32
    %488 = vector.broadcast %cst_150 : f32 to vector<1x1xf32>
    %489 = arith.mulf %488, %487 : vector<1x1xf32>
    %490 = arith.addf %486, %489 : vector<1x1xf32>
    %491 = arith.subf %490, %486 : vector<1x1xf32>
    %492 = arith.mulf %491, %491 : vector<1x1xf32>
    %cst_151 = arith.constant 0.000000e+00 : f32
    %493 = vector.broadcast %cst_151 : f32 to vector<1x1xf32>
    %494 = arith.subf %493, %492 : vector<1x1xf32>
    %cst_152 = arith.constant 2.000000e-02 : f32
    %495 = vector.broadcast %cst_152 : f32 to vector<1x1xf32>
    %496 = arith.divf %494, %495 : vector<1x1xf32>
    %cst_153 = arith.constant -2.30258512 : f32
    %497 = vector.broadcast %cst_153 : f32 to vector<1x1xf32>
    %498 = arith.subf %496, %497 : vector<1x1xf32>
    %cst_154 = arith.constant 0.918938517 : f32
    %499 = vector.broadcast %cst_154 : f32 to vector<1x1xf32>
    %500 = arith.subf %498, %499 : vector<1x1xf32>
    %501 = arith.mulf %456, %500 : vector<1x1xf32>
    %502 = arith.addf %443, %501 : vector<1x1xf32>
    %503 = arith.addf %444, %456 : vector<1x1xf32>
    %cst_155 = arith.constant 7.000000e+00 : f32
    %504 = vector.broadcast %cst_155 : f32 to vector<1x8xf32>
    %505 = arith.cmpf oeq, %92, %504 : vector<1x8xf32>
    %cst_156 = arith.constant 0.000000e+00 : f32
    %506 = vector.broadcast %cst_156 : f32 to vector<1x1xf32>
    %507 = arith.cmpf ogt, %456, %506 : vector<1x1xf32>
    %508 = vector.broadcast %507 : vector<1x1xi1> to vector<1x8xi1>
    %509 = arith.andi %505, %508 : vector<1x8xi1>
    %510 = vector.shape_cast %490 : vector<1x1xf32> to vector<1x1xf32>
    %511 = vector.broadcast %510 : vector<1x1xf32> to vector<1x8xf32>
    %512 = arith.select %509, %511, %453 : vector<1x8xi1>, vector<1x8xf32>
    %c0_157 = arith.constant 0 : index
    %c0_158 = arith.constant 0 : index
    %513 = vector.load %arg24[%c0_157, %c0_158] : memref<1x8xf32, #tpu.memory_space<vmem>>, vector<1x8xf32>
    tpu.vector_store %arg24[%c0_157, %c0_158], %512 {strides = array<i32>} : memref<1x8xf32, #tpu.memory_space<vmem>>, vector<1x8xf32>,
    %c0_159 = arith.constant 0 : index
    %c0_160 = arith.constant 0 : index
    %514 = vector.load %arg25[%c0_159, %c0_160] : memref<1x1xf32, #tpu.memory_space<vmem>>, vector<1x1xf32>
    tpu.vector_store %arg25[%c0_159, %c0_160], %502 {strides = array<i32>} : memref<1x1xf32, #tpu.memory_space<vmem>>, vector<1x1xf32>,
    %c0_161 = arith.constant 0 : index
    %c0_162 = arith.constant 0 : index
    %515 = vector.load %arg26[%c0_161, %c0_162] : memref<1x1xf32, #tpu.memory_space<vmem>>, vector<1x1xf32>
    tpu.vector_store %arg26[%c0_161, %c0_162], %503 {strides = array<i32>} : memref<1x1xf32, #tpu.memory_space<vmem>>, vector<1x1xf32>,
    return
  }
}

</mosaic_0001>

<bundles_post_ra>
// kernel: _ppo_forward_device.3
= control target key start
LH: loop header
LB: loop body
LE: loop exit
PB: predicated region body
PF: predicated region fallthrough
CT: control target
= control target key end

     0   :  { %s1781_s0 = inlined_call_operand.vmem [shape: f32[1,16], index: 0, kind: input, shape index: {}]   ;;  %s1782_s1 = inlined_call_operand.vmem [shape: f32[16,8], index: 1, kind: input, shape index: {}]   ;;  %s1783_s2 = inlined_call_operand.vmem [shape: f32[1,8], index: 2, kind: input, shape index: {}]   ;;  %s1784_s3 = inlined_call_operand.vmem [shape: f32[8,32], index: 3, kind: input, shape index: {}]   ;;  %s1785_s4 = inlined_call_operand.vmem [shape: f32[1,32], index: 4, kind: input, shape index: {}]   ;;  %s1786_s5 = inlined_call_operand.vmem [shape: f32[1,32], index: 5, kind: input, shape index: {}]   ;;  %s1787_s6 = inlined_call_operand.<no memory space> [shape: f32[1,1], index: 6, kind: input, shape index: {}]   ;;  %s1788_s7 = inlined_call_operand.vmem [shape: f32[8,8], index: 7, kind: input, shape index: {}]   ;;  %s1789_s8 = inlined_call_operand.vmem [shape: f32[1,8], index: 8, kind: input, shape index: {}]   ;;  %s1790_s9 = inlined_call_operand.vmem [shape: f32[1,8], index: 9, kind: input, shape index: {}]   ;;  %s1791_s12 = inlined_call_operand.vmem [shape: f32[8,16], index: 12, kind: input, shape index: {}]   ;;  %s1792_s13 = inlined_call_operand.vmem [shape: f32[1,16], index: 13, kind: input, shape index: {}]   ;;  %s1793_s14 = inlined_call_operand.vmem [shape: f32[1,16], index: 14, kind: input, shape index: {}]   ;;  %s1794_s15 = inlined_call_operand.vmem [shape: f32[1,16], index: 15, kind: input, shape index: {}]   ;;  %s1795_s16 = inlined_call_operand.vmem [shape: f32[1,48], index: 16, kind: input, shape index: {}]   ;;  %s1796_s17 = inlined_call_operand.vmem [shape: f32[16,48], index: 17, kind: input, shape index: {}]   ;;  %s1797_s18 = inlined_call_operand.vmem [shape: f32[16,9], index: 18, kind: input, shape index: {}]   ;;  %s1798_s19 = inlined_call_operand.vmem [shape: f32[1,9], index: 19, kind: input, shape index: {}]   ;;  %s1799_s20 = inlined_call_operand.vmem [shape: f32[1,8], index: 20, kind: input, shape index: {}]   ;;  %s1800_s21 = inlined_call_operand.vmem [shape: f32[1,24], index: 21, kind: input, shape index: {}]   ;;  %s1801_s22 = inlined_call_operand.vmem [shape: f32[1,6], index: 22, kind: input, shape index: {}]   ;;  %s1802_s23 = inlined_call_operand.hbm [shape: f32[1,1], index: 23, kind: output, shape index: {0}]   ;;  %s1803_s24 = inlined_call_operand.hbm [shape: f32[1,8], index: 24, kind: output, shape index: {1}]   ;;  %s1804_s25 = inlined_call_operand.hbm [shape: f32[1,1], index: 25, kind: output, shape index: {2}]   ;;  %s1805_s26 = inlined_call_operand.hbm [shape: f32[1,1], index: 26, kind: output, shape index: {3}]   ;;  %s1806_s10 = inlined_call_operand.<no memory space> [shape: f32[1,1], index: 10, kind: input, shape index: {}]   ;;  %s1807_s11 = inlined_call_operand.<no memory space> [shape: f32[1,1], index: 11, kind: input, shape index: {}]  }
   0x1   :  { %1809 = sst [smem:[#allocation15_spill]] %s1781_s0  ;;  %v34_v1 = vstv %s1806_s10  ;;  %v36_v2 = vstv %s1807_s11 }
   0x2   :  { %1810 = sst [smem:[#allocation16_spill]] %s1782_s1  ;;  %35 = vst [vmem:[#allocation3] sm:$0x1] %v34_v1 }
   0x3   :  { %1811 = sst [smem:[#allocation17_spill]] %s1783_s2  ;;  %37 = vst [vmem:[#allocation4] sm:$0x1] %v36_v2 }
   0x4   :  { %1812 = sst [smem:[#allocation18_spill]] %s1784_s3 }
   0x5   :  { %1813 = sst [smem:[#allocation19_spill]] %s1785_s4 }
   0x6   :  { %1814 = sst [smem:[#allocation20_spill]] %s1786_s5 }
   0x7   :  { %1815 = sst [smem:[#allocation21_spill]] %s1787_s6 }
   0x8   :  { %1816 = sst [smem:[#allocation22_spill]] %s1788_s7 }
   0x9   :  { %1817 = sst [smem:[#allocation23_spill]] %s1789_s8 }
   0xa   :  { %1818 = sst [smem:[#allocation24_spill]] %s1790_s9 }
   0xb   :  { %1819 = sst [smem:[#allocation25_spill]] %s1791_s12 }
   0xc   :  { %s1820_s7 = sld [smem:[#allocation21_spill]] }
  0x12   :  { %v32_v0 = vstv %s1820_s7 }
  0x13   :  { %33 = vst [vmem:[#allocation2] sm:$0x1] %v32_v0 }
  0x14   :  { %38 = vsyncpa [#allocation6], 0 }
  0x15   :  { %39 = vsyncpa [#allocation8], 0  ;;  %s1821_s30 = sld [smem:[#allocation16_spill]]  ;;  %vm91_vm0 = vcmask 130048  }
  0x16   :  { %s1822_s6 = sld [smem:[#allocation15_spill]] }
  0x1b   :  { %v89_v3 = vld [vmem:[%s1821_s30 + $0x8] sm:$0xff]  ;;  %v88_v4 = vld [vmem:[%s1821_s30] sm:$0xff] }
  0x1c   :  { %109 = vmatpush.msra.mxu0 %v89_v3  ;;  %v87_v5 = vld [vmem:[%s1822_s6] sm:$0x1] }
  0x1d   :  { %40 = vsyncpa [#allocation11], 0  ;;  %s1823_s27 = sld [smem:[#allocation18_spill]]  ;;  %vm117_vm1 = vcmask 64512   ;;  %vm179_vm2 = vcmask 57344   ;;  %v175_v21 = vlaneseq  ;;  %v1279_v27 = vmov 0  }
  0x1e   :  { %110 = vmatpush.msra.mxu0 %v88_v4  ;;  %s1824_s28 = sld [smem:[#allocation22_spill]]  ;;  %v174_v17 = vld [vmem:[%s1799_s20] sm:$0x1]  ;;  %1116 = vset.pattern.permute.xlu1 %v1279_v27  ;;  %v1482_v28 = vld [vmem:[%s1796_s17 + $0x8] sm:$0xff]  ;;  %v212_v29 = vld [vmem:[#allocation3] sm:$0x1] }
  0x1f   :  { %1067 = vmatmul.msk.f32.vlgmr.msra.gmra.mxu0 %vm91_vm0, %v87_v5  ;;  %s1825_s29 = sld [smem:[#allocation25_spill]]  ;;  %v176_v22 = vand.u32 127, %v175_v21  ;;  %v206_v31 = vld [vmem:[%s1801_s22] sm:$0x1]  ;;  %v215_v34 = vld [vmem:[#allocation4] sm:$0x1] }
  0x20   :  { %s1826_s30 = sld [smem:[#allocation17_spill]]  ;;  %v1492_v36 = vmul.f32 0.1, %v206_v31  ;;  %v1500_v40 = vld [vmem:[%s1796_s17] sm:$0xff]  ;;  %s1283_s5 = smov 112  }
  0x21   :  { %s1827_s12 = sld [smem:[#allocation24_spill]]  ;;  %v1475_v23 = vcvt.s32.f32 %v176_v22  ;;  %v234_v41 = vld [vmem:[%s1792_s13] sm:$0x1]  ;;  %s1280_s13 = smov 96  }
  0x22   :  { %s1828_s11 = sld [smem:[#allocation23_spill]]  ;;  %v256_v43 = vld [vmem:[%s1793_s14] sm:$0x1]  ;;  %s1285_s0 = smov 7  }
  0x23   :  { %v115_v6 = vld [vmem:[%s1823_s27] sm:$0xff]  ;;  %s1284_s27 = smov 120   ;;  %s1829_s8 = sld [smem:[#allocation19_spill]] }
  0x24   :  { %v152_v7 = vld [vmem:[%s1824_s28] sm:$0xff]  ;;  %136 = vmatpush.msra.mxu1 %v115_v6  ;;  %s1830_s22 = sld [smem:[#allocation20_spill]]  ;;  %s1288_s9 = smov 3  }
  0x25   :  { %v233_v8 = vld [vmem:[%s1825_s29] sm:$0xff]  ;;  %169 = vmatpush.msra.mxu2 %v152_v7  ;;  %s1011_s14 = sshll.u32 %s1802_s23, 4  ;;  %s1291_s2 = smov [#allocation5]   ;;  %s1012_s14 = int_to_ptr.hbm [resolvable:$true] %s1011_s14 }
  0x26   :  { %251 = vmatpush.msra.mxu3 %v233_v8  ;;  %v90_v9 = vld [vmem:[%s1826_s30] sm:$0x1]  ;;  %294 = vmatpush.msrb.mxu1 %v1482_v28  ;;  %s1022_s1 = sshll.u32 %s1803_s24, 4  ;;  %s1033_s28 = sshll.u32 %s1804_s25, 4  ;;  %s1023_s1 = int_to_ptr.hbm [resolvable:$true] %s1022_s1  ;;  %s1034_s28 = int_to_ptr.hbm [resolvable:$true] %s1033_s28 }
  0x27   :  { %v207_v11 = vld [vmem:[%s1827_s12] sm:$0x1]  ;;  %s1292_s12 = smov [#allocation10]  }
  0x28   :  { %v153_v15 = vld [vmem:[%s1828_s11] sm:$0x1]  ;;  %420 = vmatpush.msrb.mxu3 %v1482_v28  ;;  %295 = vmatpush.msrb.mxu1 %v1500_v40  ;;  %s1042_s10 = sshll.u32 %s1292_s12, 4  ;;  %s1043_s10 = int_to_ptr.vmem [resolvable:$true] %s1042_s10 }
  0x29   :  { %v264_v48 = vld [vmem:[%s1794_s15] sm:$0x1]  ;;  %s1281_s15 = smov 32  }
  0x2a   :  { %421 = vmatpush.msrb.mxu3 %v1500_v40  ;;  %v1530_v53 = vld [vmem:[%s1795_s16] sm:$0x1]  ;;  %s1282_s16 = smov 16  }
  0x9c   :  { %v112_v10 = vpop.f32.mrf.mxu0 }
  0x9d   :  { %v113_v12 = vadd.f32 %v112_v10, %v90_v9  ;;  %v1539_v9 = vld [vmem:[%s1797_s18 + $0x8] sm:$0xff]  ;;  %v1544_v10 = vld [vmem:[%s1797_s18] sm:$0xff] }
  0x9e   :  { %362 = vmatpush.msrb.mxu2 %v1539_v9  ;;  %485 = vmatpush.msrb.mxu0 %v1539_v9 }
  0x9f   :  { %1068 = vmatmul.msk.f32.vlgmr.msra.gmra.mxu1 %vm117_vm1, %v113_v12  ;;  %1069 = vmatmul.msk.f32.vlgmr.msra.gmra.mxu2 %vm117_vm1, %v113_v12  ;;  %v208_v13 = vmul.f32 %v207_v11, %v113_v12 }
  0xa0   :  { %1072 = vmatmul.msk.f32.vlgmr.msra.gmra.mxu3 %vm117_vm1, %v113_v12  ;;  %535 = vmatpush.msra.mxu1 %v1482_v28 }
  0xa1   :  { %v209_v14 = vsel %vm179_vm2, %v208_v13, 0.0  ;;  %663 = vmatpush.msra.mxu3 %v1482_v28  ;;  %363 = vmatpush.msrb.mxu2 %v1544_v10 }
  0xa2   :  { %210 = vadd.xlane.f32.xlu1 %v209_v14  ;;  %536 = vmatpush.msra.mxu1 %v1500_v40 }
  0xa3   :  { %664 = vmatpush.msra.mxu3 %v1500_v40  ;;  %486 = vmatpush.msrb.mxu0 %v1544_v10 }
  0xa4   :  { %600 = vmatpush.msra.mxu2 %v1539_v9 }
  0xa5   :  { %728 = vmatpush.msra.mxu0 %v1539_v9 }
  0xa6   :  { %601 = vmatpush.msra.mxu2 %v1544_v10 }
  0xa7   :  { %729 = vmatpush.msra.mxu0 %v1544_v10 }
 0x115   :  { %v211_v33 = vpop.xlane.xlu1 %210 }
 0x11c   :  { %v1524_v51 = vpop.f32.mrf.mxu1 }
 0x122   :  { %v171_v16 = vpop.f32.mrf.mxu2 }
 0x123   :  { %v1471_v18 = vadd.f32 %v171_v16, %v153_v15  ;;  %v253_v44 = vpop.f32.mrf.mxu3 }
 0x125   :  { %v178_v19 = vadd.f32 %v174_v17, %v1471_v18 }
 0x127   :  { %v180_v20 = vsel %vm179_vm2, %v178_v19, -inf }
 0x128   :  { %181 = vmax.xlane.f32.xlu0 %v180_v20 }
 0x19b   :  { %v182_v24 = vpop.xlane.xlu0 %181 }
 0x19c   :  { %vm183_vm3 = vcmp.ge.f32.partialorder %v178_v19, %v182_v24 }
 0x19d   :  { %v184_v25 = vsel %vm183_vm3, %v1475_v23, -1.0 }
 0x19e   :  { %v185_v26 = vsel %vm179_vm2, %v184_v25, -inf }
 0x19f   :  { %186 = vmax.xlane.f32.xlu0 %v185_v26 }
 0x212   :  { %v1486_v30 = vpop.xlane.xlu0 %186 }
 0x213   :  { %v213_v32 = vmul.f32 %v212_v29, %v1486_v30  ;;  %v235_v42 = vmul.f32 %v234_v41, %v1486_v30 }
 0x215   :  { %v214_v35 = vadd.f32 %v213_v32, %v211_v33  ;;  %v254_v46 = vadd.f32 %v253_v44, %v235_v42 }
 0x217   :  { %v216_v37 = vadd.f32 %v215_v34, %v214_v35 }
 0x219   :  { %v218_v38 = vadd.f32 %v1492_v36, %v216_v37 }
 0x21b   :  { %259 = vperm.xlu1 %1116, %v218_v38   ;;  %v1495_v39 = vsub.f32 %v218_v38, %v216_v37 }
 0x28d   :  { %v1515_v45 = vpop.permute.xlu1 %259 }
 0x28e   :  { %v262_v47 = vmul.f32 %v1515_v45, %v256_v43 }
 0x290   :  { %v263_v49 = vadd.f32 %v262_v47, %v254_v46 }
 0x292   :  { %v265_v50 = vadd.f32 %v264_v48, %v263_v49 }
 0x294   :  { %1073 = vmatmul.msk.f32.vlgmr.msrb.gmra.mxu1 %vm91_vm0, %v265_v50 }
 0x295   :  { %776 = vmatpush.msrb.mxu1 %v1482_v28 }
 0x297   :  { %777 = vmatpush.msrb.mxu1 %v1500_v40 }
 0x311   :  { %v297_v52 = vpop.f32.mrf.mxu1 }
 0x312   :  { %321 = vrot.lane.b32.xlu2 %v297_v52, %s1280_s13  ;;  %v300_v54 = vadd.f32 %v297_v52, %v1530_v53 }
 0x314   :  { %v1074_v55 = vmul.f32 -1.442695, %v300_v54 }
 0x316   :  { %1121 = vpow2.f32 %v1074_v55 }
 0x31c   :  { %v1122_v56 = vpop.eup %1121 }
 0x31d   :  { %v304_v57 = vadd.f32 1.0, %v1122_v56 }
 0x31f   :  { %1123 = vrcp.f32 %v304_v57  ;;  %v316_v63 = vand.u32 2147483648, %v304_v57  ;;  %vm310_vm5 = vweird.f32 %v304_v57  ;;  %v314_v0 = vand.u32 2147483647, %v304_v57 }
 0x321   :  { %v317_v2 = vor.u32 1.1754944e-38, %v316_v63  ;;  %vm315_vm7 = vcmp.eq.f32.partialorder %v314_v0, 8.507059e+37 }
 0x325   :  { %v1124_v58 = vpop.eup %1123 }
 0x326   :  { %v306_v59 = vmul.f32 %v1124_v58, %v304_v57  ;;  %vm311_vm4 = vweird.f32 %v1124_v58 }
 0x327   :  { %vm312_vm6 = vmor %vm310_vm5, %vm311_vm4 }
 0x328   :  { %v307_v60 = vsub.f32 1.0, %v306_v59 }
 0x32a   :  { %v308_v61 = vmul.f32 %v1124_v58, %v307_v60 }
 0x32c   :  { %v309_v62 = vadd.f32 %v1124_v58, %v308_v61 }
 0x32e   :  { %v313_v1 = vsel %vm312_vm6, %v1124_v58, %v309_v62 }
 0x32f   :  { %v318_v4 = vsel %vm315_vm7, %v317_v2, %v313_v1 }
 0x330   :  { %v331_v12 = vsub.f32 1.0, %v318_v4 }
 0x36c   :  { %v322_v3 = vpop.permute.xlu2 %321 }
 0x36d   :  { %v324_v5 = vmul.f32 %v322_v3, %v318_v4 }
 0x36f   :  { %326 = vrot.lane.b32.xlu2 %v324_v5, %s1281_s15 }
 0x377   :  { %337 = vrot.lane.b32.xlu2 %v265_v50, %s1282_s16 }
 0x3c9   :  { %v327_v6 = vpop.permute.xlu2 %326 }
 0x3ca   :  { %v329_v7 = vadd.f32 %v327_v6, %v1530_v53 }
 0x3cc   :  { %1125 = vtanh.f32 %v329_v7 }
 0x3d1   :  { %v338_v11 = vpop.permute.xlu2 %337 }
 0x3d2   :  { %v1126_v8 = vpop.eup %1125  ;;  %v340_v14 = vmul.f32 %v338_v11, %v318_v4 }
 0x3d3   :  { %333 = vrot.lane.b32.xlu0 %v1126_v8, %s1283_s5 }
 0x445   :  { %v334_v13 = vpop.permute.xlu0 %333 }
 0x446   :  { %v336_v15 = vmul.f32 %v334_v13, %v331_v12 }
 0x448   :  { %v341_v16 = vadd.f32 %v340_v14, %v336_v15 }
 0x44a   :  { %v343_v17 = vperm.slane %v341_v16, 0 }
 0x44c   :  { %344 = vrot.lane.b32.xlu2 %v343_v17, %s1283_s5 }
 0x4a6   :  { %v345_v19 = vpop.permute.xlu2 %344 }
 0x4a7   :  { %1075 = vmatmul.msk.f32.vlgmr.msrb.gmra.mxu2 %vm91_vm0, %v345_v19  ;;  %1077 = vmatmul.msk.f32.vlgmr.msrb.gmra.mxu3 %vm91_vm0, %v345_v19 }
 0x4a8   :  { %902 = vmatpush.msrb.mxu3 %v1482_v28  ;;  %841 = vmatpush.msrb.mxu2 %v1539_v9 }
 0x4aa   :  { %903 = vmatpush.msrb.mxu3 %v1500_v40  ;;  %842 = vmatpush.msrb.mxu2 %v1544_v10 }
 0x52a   :  { %v423_v20 = vpop.f32.mrf.mxu3 }
 0x52b   :  { %447 = vrot.lane.b32.xlu2 %v423_v20, %s1280_s13  ;;  %v426_v21 = vadd.f32 %v423_v20, %v1530_v53 }
 0x52d   :  { %v1078_v22 = vmul.f32 -1.442695, %v426_v21 }
 0x52f   :  { %1127 = vpow2.f32 %v1078_v22 }
 0x535   :  { %v1128_v24 = vpop.eup %1127 }
 0x536   :  { %v430_v25 = vadd.f32 1.0, %v1128_v24 }
 0x538   :  { %1129 = vrcp.f32 %v430_v25  ;;  %v442_v32 = vand.u32 2147483648, %v430_v25  ;;  %vm436_vm9 = vweird.f32 %v430_v25  ;;  %v440_v33 = vand.u32 2147483647, %v430_v25 }
 0x53a   :  { %v443_v35 = vor.u32 1.1754944e-38, %v442_v32  ;;  %vm441_vm11 = vcmp.eq.f32.partialorder %v440_v33, 8.507059e+37 }
 0x53e   :  { %v1130_v26 = vpop.eup %1129 }
 0x53f   :  { %v432_v27 = vmul.f32 %v1130_v26, %v430_v25  ;;  %vm437_vm8 = vweird.f32 %v1130_v26 }
 0x540   :  { %vm438_vm10 = vmor %vm436_vm9, %vm437_vm8 }
 0x541   :  { %v433_v29 = vsub.f32 1.0, %v432_v27 }
 0x543   :  { %v434_v28 = vmul.f32 %v1130_v26, %v433_v29 }
 0x545   :  { %v435_v31 = vadd.f32 %v1130_v26, %v434_v28 }
 0x547   :  { %v439_v34 = vsel %vm438_vm10, %v1130_v26, %v435_v31 }
 0x548   :  { %v444_v38 = vsel %vm441_vm11, %v443_v35, %v439_v34 }
 0x549   :  { %v457_v44 = vsub.f32 1.0, %v444_v38  ;;  %v463_v47 = vmul.f32 %v444_v38, %v341_v16 }
 0x585   :  { %v448_v37 = vpop.permute.xlu2 %447 }
 0x586   :  { %v450_v40 = vmul.f32 %v448_v37, %v444_v38 }
 0x588   :  { %452 = vrot.lane.b32.xlu1 %v450_v40, %s1281_s15 }
 0x5fa   :  { %v453_v41 = vpop.permute.xlu1 %452 }
 0x5fb   :  { %v455_v42 = vadd.f32 %v453_v41, %v1530_v53 }
 0x5fd   :  { %1131 = vtanh.f32 %v455_v42 }
 0x603   :  { %v1132_v43 = vpop.eup %1131 }
 0x604   :  { %459 = vrot.lane.b32.xlu0 %v1132_v43, %s1283_s5 }
 0x676   :  { %v460_v46 = vpop.permute.xlu0 %459 }
 0x677   :  { %v462_v48 = vmul.f32 %v460_v46, %v457_v44 }
 0x679   :  { %v464_v49 = vadd.f32 %v463_v47, %v462_v48 }
 0x67b   :  { %v466_v50 = vperm.slane %v464_v49, 0 }
 0x67d   :  { %467 = vrot.lane.b32.xlu2 %v466_v50, %s1283_s5 }
 0x6d7   :  { %v468_v52 = vpop.permute.xlu2 %467 }
 0x6d8   :  { %1079 = vmatmul.msk.f32.vlgmr.msrb.gmra.mxu0 %vm91_vm0, %v468_v52  ;;  %1082 = vmatmul.msk.f32.vlgmr.msra.gmra.mxu1 %vm91_vm0, %v468_v52 }
 0x6d9   :  { %967 = vmatpush.msrb.mxu0 %v1539_v9 }
 0x6db   :  { %968 = vmatpush.msrb.mxu0 %v1544_v10 }
 0x755   :  { %v538_v54 = vpop.f32.mrf.mxu1 }
 0x756   :  { %562 = vrot.lane.b32.xlu1 %v538_v54, %s1280_s13  ;;  %v541_v55 = vadd.f32 %v538_v54, %v1530_v53 }
 0x758   :  { %v1083_v56 = vmul.f32 -1.442695, %v541_v55 }
 0x75a   :  { %1133 = vpow2.f32 %v1083_v56 }
 0x760   :  { %v1134_v57 = vpop.eup %1133 }
 0x761   :  { %v545_v58 = vadd.f32 1.0, %v1134_v57 }
 0x763   :  { %1135 = vrcp.f32 %v545_v58  ;;  %v557_v0 = vand.u32 2147483648, %v545_v58  ;;  %vm551_vm13 = vweird.f32 %v545_v58  ;;  %v555_v1 = vand.u32 2147483647, %v545_v58 }
 0x765   :  { %v558_v3 = vor.u32 1.1754944e-38, %v557_v0  ;;  %vm556_vm15 = vcmp.eq.f32.partialorder %v555_v1, 8.507059e+37 }
 0x769   :  { %v1136_v59 = vpop.eup %1135 }
 0x76a   :  { %v547_v60 = vmul.f32 %v1136_v59, %v545_v58  ;;  %vm552_vm12 = vweird.f32 %v1136_v59 }
 0x76b   :  { %vm553_vm14 = vmor %vm551_vm13, %vm552_vm12 }
 0x76c   :  { %v548_v61 = vsub.f32 1.0, %v547_v60 }
 0x76e   :  { %v549_v62 = vmul.f32 %v1136_v59, %v548_v61 }
 0x770   :  { %v550_v63 = vadd.f32 %v1136_v59, %v549_v62 }
 0x772   :  { %v554_v2 = vsel %vm553_vm14, %v1136_v59, %v550_v63  ;;  %vm144_vm14 = vcmask 253952  }
 0x773   :  { %v559_v5 = vsel %vm556_vm15, %v558_v3, %v554_v2  ;;  %vm150_vm15 = vcmask 0  }
 0x774   :  { %v572_v10 = vsub.f32 1.0, %v559_v5  ;;  %v578_v12 = vmul.f32 %v559_v5, %v464_v49 }
 0x7c8   :  { %v563_v4 = vpop.permute.xlu1 %562 }
 0x7c9   :  { %v565_v6 = vmul.f32 %v563_v4, %v559_v5 }
 0x7cb   :  { %567 = vrot.lane.b32.xlu0 %v565_v6, %s1281_s15 }
 0x83d   :  { %v568_v7 = vpop.permute.xlu0 %567 }
 0x83e   :  { %v570_v8 = vadd.f32 %v568_v7, %v1530_v53 }
 0x840   :  { %1137 = vtanh.f32 %v570_v8 }
 0x846   :  { %v1138_v9 = vpop.eup %1137 }
 0x847   :  { %574 = vrot.lane.b32.xlu2 %v1138_v9, %s1283_s5 }
 0x8a1   :  { %v575_v11 = vpop.permute.xlu2 %574 }
 0x8a2   :  { %v577_v13 = vmul.f32 %v575_v11, %v572_v10 }
 0x8a4   :  { %v579_v14 = vadd.f32 %v578_v12, %v577_v13 }
 0x8a6   :  { %v581_v15 = vperm.slane %v579_v14, 0 }
 0x8a8   :  { %582 = vrot.lane.b32.xlu1 %v581_v15, %s1283_s5 }
 0x91a   :  { %v583_v16 = vpop.permute.xlu1 %582 }
 0x91b   :  { %1084 = vmatmul.msk.f32.vlgmr.msra.gmra.mxu2 %vm91_vm0, %v583_v16  ;;  %1086 = vmatmul.msk.f32.vlgmr.msra.gmra.mxu3 %vm91_vm0, %v583_v16 }
 0x99e   :  { %v666_v17 = vpop.f32.mrf.mxu3 }
 0x99f   :  { %690 = vrot.lane.b32.xlu0 %v666_v17, %s1280_s13  ;;  %v669_v19 = vadd.f32 %v666_v17, %v1530_v53 }
 0x9a1   :  { %v1087_v20 = vmul.f32 -1.442695, %v669_v19 }
 0x9a3   :  { %1139 = vpow2.f32 %v1087_v20 }
 0x9a9   :  { %v1140_v21 = vpop.eup %1139 }
 0x9aa   :  { %v673_v22 = vadd.f32 1.0, %v1140_v21 }
 0x9ac   :  { %1141 = vrcp.f32 %v673_v22  ;;  %v685_v28 = vand.u32 2147483648, %v673_v22  ;;  %vm679_vm3 = vweird.f32 %v673_v22  ;;  %v683_v31 = vand.u32 2147483647, %v673_v22 }
 0x9ae   :  { %v686_v33 = vor.u32 1.1754944e-38, %v685_v28  ;;  %vm684_vm5 = vcmp.eq.f32.partialorder %v683_v31, 8.507059e+37 }
 0x9b2   :  { %v1142_v24 = vpop.eup %1141 }
 0x9b3   :  { %v675_v25 = vmul.f32 %v1142_v24, %v673_v22  ;;  %vm680_vm1 = vweird.f32 %v1142_v24 }
 0x9b4   :  { %vm681_vm4 = vmor %vm679_vm3, %vm680_vm1 }
 0x9b5   :  { %v676_v26 = vsub.f32 1.0, %v675_v25 }
 0x9b7   :  { %v677_v27 = vmul.f32 %v1142_v24, %v676_v26 }
 0x9b9   :  { %v678_v29 = vadd.f32 %v1142_v24, %v677_v27 }
 0x9bb   :  { %v682_v32 = vsel %vm681_vm4, %v1142_v24, %v678_v29 }
 0x9bc   :  { %v687_v35 = vsel %vm684_vm5, %v686_v33, %v682_v32  ;;  %vm200_vm5 = vcmp.eq.f32.partialorder %v1475_v23, %v1486_v30 }
 0x9bd   :  { %v700_v42 = vsub.f32 1.0, %v687_v35  ;;  %v706_v44 = vmul.f32 %v687_v35, %v579_v14 }
 0xa11   :  { %v691_v34 = vpop.permute.xlu0 %690 }
 0xa12   :  { %v693_v37 = vmul.f32 %v691_v34, %v687_v35  ;;  %v1120_v35 = vld [vmem:[%s1800_s21] ss:$0 sm:$0xff] }
 0xa14   :  { %695 = vrot.lane.b32.xlu2 %v693_v37, %s1281_s15  ;;  %v365_v37 = vpop.f32.mrf.mxu2 }
 0xa6e   :  { %v696_v38 = vpop.permute.xlu2 %695 }
 0xa6f   :  { %v698_v40 = vadd.f32 %v696_v38, %v1530_v53 }
 0xa71   :  { %1143 = vtanh.f32 %v698_v40 }
 0xa77   :  { %v1144_v41 = vpop.eup %1143 }
 0xa78   :  { %702 = vrot.lane.b32.xlu1 %v1144_v41, %s1283_s5  ;;  %v603_v41 = vpop.f32.mrf.mxu2 }
 0xaea   :  { %v703_v43 = vpop.permute.xlu1 %702 }
 0xaeb   :  { %v705_v46 = vmul.f32 %v703_v43, %v700_v42  ;;  %v1606_v42 = vld [vmem:[%s1798_s19] sm:$0x1] }
 0xaec   :  { %v116_v43 = vld [vmem:[%s1829_s8] sm:$0x1] }
 0xaed   :  { %v707_v47 = vadd.f32 %v706_v44, %v705_v46  ;;  %v1612_v44 = vadd.f32 %v603_v41, %v1606_v42 }
 0xaef   :  { %v709_v48 = vperm.slane %v707_v47, 0 }
 0xaf1   :  { %710 = vrot.lane.b32.xlu0 %v709_v48, %s1283_s5 }
 0xb63   :  { %v711_v49 = vpop.permute.xlu0 %710 }
 0xb64   :  { %1088 = vmatmul.msk.f32.vlgmr.msra.gmra.mxu0 %vm91_vm0, %v711_v49  ;;  %1091 = vmatmul.msk.f32.vlgmr.msrb.gmra.mxu1 %vm91_vm0, %v711_v49 }
 0xbe1   :  { %v779_v50 = vpop.f32.mrf.mxu1 }
 0xbe2   :  { %803 = vrot.lane.b32.xlu2 %v779_v50, %s1280_s13  ;;  %v782_v52 = vadd.f32 %v779_v50, %v1530_v53  ;;  %v1619_v50 = vadd.f32 %v365_v37, %v1606_v42 }
 0xbe4   :  { %v1092_v54 = vmul.f32 -1.442695, %v782_v52  ;;  %v377_v52 = vsel %vm179_vm2, %v1619_v50, -inf }
 0xbe6   :  { %1145 = vpow2.f32 %v1092_v54 }
 0xbec   :  { %v1146_v55 = vpop.eup %1145 }
 0xbed   :  { %v786_v56 = vadd.f32 1.0, %v1146_v55 }
 0xbef   :  { %1147 = vrcp.f32 %v786_v56  ;;  %v798_v62 = vand.u32 2147483648, %v786_v56  ;;  %vm792_vm7 = vweird.f32 %v786_v56  ;;  %v796_v63 = vand.u32 2147483647, %v786_v56 }
 0xbf1   :  { %v799_v1 = vor.u32 1.1754944e-38, %v798_v62  ;;  %vm797_vm9 = vcmp.eq.f32.partialorder %v796_v63, 8.507059e+37 }
 0xbf5   :  { %v1148_v57 = vpop.eup %1147 }
 0xbf6   :  { %v788_v58 = vmul.f32 %v1148_v57, %v786_v56  ;;  %vm793_vm6 = vweird.f32 %v1148_v57 }
 0xbf7   :  { %vm794_vm8 = vmor %vm792_vm7, %vm793_vm6 }
 0xbf8   :  { %v789_v59 = vsub.f32 1.0, %v788_v58 }
 0xbfa   :  { %v790_v60 = vmul.f32 %v1148_v57, %v789_v59 }
 0xbfc   :  { %v791_v61 = vadd.f32 %v1148_v57, %v790_v60 }
 0xbfe   :  { %v795_v0 = vsel %vm794_vm8, %v1148_v57, %v791_v61 }
 0xbff   :  { %v800_v3 = vsel %vm797_vm9, %v799_v1, %v795_v0 }
 0xc00   :  { %v813_v8 = vsub.f32 1.0, %v800_v3  ;;  %v819_v10 = vmul.f32 %v800_v3, %v707_v47 }
 0xc3c   :  { %v804_v2 = vpop.permute.xlu2 %803 }
 0xc3d   :  { %v806_v4 = vmul.f32 %v804_v2, %v800_v3 }
 0xc3f   :  { %808 = vrot.lane.b32.xlu1 %v806_v4, %s1281_s15  ;;  %v620_v4 = vsel %vm179_vm2, %v1612_v44, -inf }
 0xcb1   :  { %v809_v5 = vpop.permute.xlu1 %808 }
 0xcb2   :  { %v811_v6 = vadd.f32 %v809_v5, %v1530_v53 }
 0xcb4   :  { %1149 = vtanh.f32 %v811_v6 }
 0xcba   :  { %v1150_v7 = vpop.eup %1149 }
 0xcbb   :  { %815 = vrot.lane.b32.xlu0 %v1150_v7, %s1283_s5  ;;  %v492_v7 = vperm.slane %v1492_v36, 0  ;;  %v188_v36 = vsel %vm179_vm2, %v1471_v18, -inf }
 0xd2d   :  { %v816_v9 = vpop.permute.xlu0 %815 }
 0xd2e   :  { %v818_v11 = vmul.f32 %v816_v9, %v813_v8  ;;  %v272_v8 = vld [vmem:[%s1800_s21] sm:$0x1]  ;;  %s1286_s21 = smov 5  }
 0xd2f   :  { %v148_v9 = vld [vmem:[#allocation2] sm:$0x1] }
 0xd30   :  { %v820_v12 = vadd.f32 %v819_v10, %v818_v11 }
 0xd32   :  { %v822_v13 = vperm.slane %v820_v12, 0 }
 0xd34   :  { %823 = vrot.lane.b32.xlu2 %v822_v13, %s1283_s5 }
 0xd8e   :  { %v824_v14 = vpop.permute.xlu2 %823 }
 0xd8f   :  { %1093 = vmatmul.msk.f32.vlgmr.msrb.gmra.mxu2 %vm91_vm0, %v824_v14  ;;  %1095 = vmatmul.msk.f32.vlgmr.msrb.gmra.mxu3 %vm91_vm0, %v824_v14 }
 0xe12   :  { %v905_v15 = vpop.f32.mrf.mxu3  ;;  %v844_v62 = vpop.f32.mrf.mxu2 }
 0xe13   :  { %929 = vrot.lane.b32.xlu1 %v905_v15, %s1280_s13  ;;  %v908_v16 = vadd.f32 %v905_v15, %v1530_v53  ;;  %v1628_v0 = vadd.f32 %v844_v62, %v1606_v42 }
 0xe15   :  { %v1096_v17 = vmul.f32 -1.442695, %v908_v16  ;;  %v859_v14 = vsel %vm179_vm2, %v1628_v0, -inf }
 0xe17   :  { %1151 = vpow2.f32 %v1096_v17 }
 0xe1d   :  { %v1152_v19 = vpop.eup %1151 }
 0xe1e   :  { %v912_v20 = vadd.f32 1.0, %v1152_v19 }
 0xe20   :  { %1153 = vrcp.f32 %v912_v20  ;;  %v924_v27 = vand.u32 2147483648, %v912_v20  ;;  %vm918_vm11 = vweird.f32 %v912_v20  ;;  %v922_v29 = vand.u32 2147483647, %v912_v20 }
 0xe22   :  { %v925_v31 = vor.u32 1.1754944e-38, %v924_v27  ;;  %vm923_vm13 = vcmp.eq.f32.partialorder %v922_v29, 8.507059e+37 }
 0xe26   :  { %v1154_v21 = vpop.eup %1153 }
 0xe27   :  { %v914_v22 = vmul.f32 %v1154_v21, %v912_v20  ;;  %vm919_vm10 = vweird.f32 %v1154_v21 }
 0xe28   :  { %vm920_vm12 = vmor %vm918_vm11, %vm919_vm10 }
 0xe29   :  { %v915_v24 = vsub.f32 1.0, %v914_v22 }
 0xe2b   :  { %v916_v25 = vmul.f32 %v1154_v21, %v915_v24 }
 0xe2d   :  { %v917_v26 = vadd.f32 %v1154_v21, %v916_v25 }
 0xe2f   :  { %v921_v28 = vsel %vm920_vm12, %v1154_v21, %v917_v26  ;;  %vm274_vm12 = vcmp.eq.f32.partialorder %v1475_v23, 1.0 }
 0xe30   :  { %v926_v33 = vsel %vm923_vm13, %v925_v31, %v921_v28  ;;  %vm273_vm13 = vcmp.eq.f32.partialorder %v1475_v23, 0.0 }
 0xe31   :  { %v939_v57 = vsub.f32 1.0, %v926_v33  ;;  %v945_v59 = vmul.f32 %v926_v33, %v820_v12  ;;  %v368_v12 = vadd.f32 %v1619_v50, %v272_v8 }
 0xe33   :  { %v369_v13 = vsel %vm179_vm2, %v368_v12, -inf }
 0xe85   :  { %v930_v32 = vpop.permute.xlu1 %929 }
 0xe86   :  { %v932_v34 = vmul.f32 %v930_v32, %v926_v33 }
 0xe88   :  { %934 = vrot.lane.b32.xlu0 %v932_v34, %s1281_s15  ;;  %s1009_s15 = sshll.u32 %s1291_s2, 4  ;;  %s1010_s15 = int_to_ptr.vmem [resolvable:$true] %s1009_s15 }
 0xe90   :  { %608 = vrot.lane.b32.xlu0 %v1120_v35, %s1284_s27 }
 0xefa   :  { %v935_v38 = vpop.permute.xlu0 %934 }
 0xefb   :  { %v937_v40 = vadd.f32 %v935_v38, %v1530_v53  ;;  %v139_v53 = vadd.f32 %v1524_v51, %v116_v43  ;;  %v142_v51 = vld [vmem:[%s1830_s22] sm:$0x1]  ;;  %v1287_v43 = vmov 8  }
 0xefc   :  { %1117 = vset.pattern.permute.xlu2 %v1287_v43  ;;  %1118 = vset.pattern.permute.xlu0 %v1287_v43 }
 0xefd   :  { %1155 = vtanh.f32 %v937_v40  ;;  %1119 = vset.pattern.permute.xlu1 %v1287_v43 }
 0xefe   :  { %1157 = vtanh.f32 %v139_v53 }
 0xf02   :  { %v609_v46 = vpop.permute.xlu0 %608 }
 0xf03   :  { %v1156_v47 = vpop.eup %1155  ;;  %v611_v48 = vadd.f32 %v609_v46, %v1612_v44 }
 0xf04   :  { %941 = vrot.lane.b32.xlu2 %v1156_v47, %s1283_s5  ;;  %v1158_v54 = vpop.eup %1157 }
 0xf05   :  { %v612_v49 = vsel %vm179_vm2, %v611_v48, -inf  ;;  %v143_v55 = vmul.f32 %v1158_v54, %v142_v51 }
 0xf06   :  { %613 = vmax.xlane.f32.xlu0 %v612_v49 }
 0xf07   :  { %v145_v56 = vsel %vm144_vm14, %v143_v55, 0.0  ;;  %v488_v55 = vpop.f32.mrf.mxu0  ;;  %vm399_vm14 = vcmp.eq.f32.partialorder %v1475_v23, 2.0 }
 0xf0c   :  { %847 = vrot.lane.b32.xlu2 %v1120_v35, %s1283_s5 }
 0xf0e   :  { %378 = vmax.xlane.f32.xlu0 %v377_v52 }
 0xf16   :  { %146 = vadd.xlane.f32.xlu0 %v145_v56  ;;  %v489_v56 = vadd.f32 %v488_v55, %v1606_v42 }
 0xf5e   :  { %v942_v58 = vpop.permute.xlu2 %941 }
 0xf5f   :  { %v944_v60 = vmul.f32 %v942_v58, %v939_v57 }
 0xf61   :  { %v946_v61 = vadd.f32 %v945_v59, %v944_v60 }
 0xf63   :  { %v948_v63 = vperm.slane %v946_v61, 0  ;;  %v1289_v61 = vmov 0.02  }
 0xf65   :  { %949 = vrot.lane.b32.xlu1 %v948_v63, %s1283_s5  ;;  %s1044_s5 = sshll.u32 %s1805_s26, 4  ;;  %s1293_s26 = smov [#allocation7]   ;;  %s1045_s5 = int_to_ptr.hbm [resolvable:$true] %s1044_s5 }
 0xf66   :  { %v848_v1 = vpop.permute.xlu2 %847  ;;  %s1020_s6 = sshll.u32 %s1293_s26, 4  ;;  %s1021_s6 = int_to_ptr.vmem [resolvable:$true] %s1020_s6 }
 0xf67   :  { %v850_v2 = vadd.f32 %v848_v1, %v1628_v0 }
 0xf69   :  { %v851_v3 = vsel %vm179_vm2, %v850_v2, -inf }
 0xf6a   :  { %852 = vmax.xlane.f32.xlu2 %v851_v3 }
 0xf72   :  { %621 = vmax.xlane.f32.xlu2 %v620_v4 }
 0xf79   :  { %v614_v5 = vpop.xlane.xlu0 %613 }
 0xf7a   :  { %vm615_vm1 = vcmp.ge.f32.partialorder %v611_v48, %v614_v5 }
 0xf7b   :  { %v616_v17 = vsel %vm615_vm1, %v1475_v23, -1.0  ;;  %vm510_vm1 = vcmp.eq.f32.partialorder %v1475_v23, 3.0 }
 0xf7c   :  { %v617_v19 = vsel %vm179_vm2, %v616_v17, -inf }
 0xf81   :  { %v1635_v6 = vpop.xlane.xlu0 %378 }
 0xf82   :  { %v380_v15 = vsub.f32 %v1619_v50, %v1635_v6 }
 0xf84   :  { %v381_v16 = vmul.f32 1.442695, %v380_v15 }
 0xf86   :  { %1159 = vpow2.f32 %v381_v16 }
 0xf89   :  { %v147_v10 = vpop.xlane.xlu0 %146 }
 0xf8a   :  { %v149_v11 = vadd.f32 %v148_v9, %v147_v10  ;;  %493 = vrot.lane.b32.xlu2 %v492_v7, %s1285_s0 }
 0xf8c   :  { %151 = vst.msk [vmem:[#allocation5] sm:$0x1] %vm150_vm15, %v149_v11  ;;  %v1160_v20 = vpop.eup %1159 }
 0xf8d   :  { %v383_v21 = vsel %vm179_vm2, %v1160_v20, 0.0  ;;  %v731_v20 = vpop.f32.mrf.mxu0  ;;  %1014 = dma.vmem_to_hbm [thread:$0]  %s1010_s15, 16, %s1012_s14, [#allocation6]  }
 0xf8f   :  { %370 = vmax.xlane.f32.xlu1 %v369_v13  ;;  %v1290_v13 = vmov 0.0  }
 0xf97   :  { %189 = vmax.xlane.f32.xlu1 %v188_v36 }
 0xf9f   :  { %860 = vmax.xlane.f32.xlu1 %v859_v14 }
 0xfb3   :  { %618 = vmax.xlane.f32.xlu2 %v617_v19 }
 0xfb8   :  { %734 = vrot.lane.b32.xlu1 %v492_v7, %s1286_s21 }
 0xfbb   :  { %384 = vadd.xlane.f32.xlu2 %v383_v21 }
 0xfd7   :  { %v950_v22 = vpop.permute.xlu1 %949 }
 0xfd8   :  { %1097 = vmatmul.msk.f32.vlgmr.msrb.gmra.mxu0 %vm91_vm0, %v950_v22 }
 0xfdd   :  { %v853_v24 = vpop.xlane.xlu2 %852 }
 0xfde   :  { %vm854_vm3 = vcmp.ge.f32.partialorder %v850_v2, %v853_v24 }
 0xfdf   :  { %v855_v25 = vsel %vm854_vm3, %v1475_v23, -1.0 }
 0xfe0   :  { %v856_v26 = vsel %vm179_vm2, %v855_v25, -inf }
 0xfe2   :  { %857 = vmax.xlane.f32.xlu1 %v856_v26 }
 0xfe5   :  { %v1656_v27 = vpop.xlane.xlu2 %621 }
 0xfe6   :  { %v623_v29 = vsub.f32 %v1612_v44, %v1656_v27 }
 0xfe8   :  { %v624_v28 = vmul.f32 1.442695, %v623_v29 }
 0xfea   :  { %1161 = vpow2.f32 %v624_v28 }
 0xfed   :  { %v494_v47 = vpop.permute.xlu2 %493 }
 0xfee   :  { %v496_v58 = vadd.f32 %v494_v47, %v489_v56 }
 0xff0   :  { %v1162_v31 = vpop.eup %1161  ;;  %v497_v2 = vsub.f32 %v496_v58, %v489_v56 }
 0xff1   :  { %v626_v32 = vsel %vm179_vm2, %v1162_v31, 0.0 }
 0xff2   :  { %627 = vadd.xlane.f32.xlu1 %v626_v32  ;;  %v498_v4 = vmul.f32 %v497_v2, %v497_v2  ;;  %v275_v2 = vsel %vm274_vm12, %v1515_v45, 0.0 }
0x1002   :  { %v371_v33 = vpop.xlane.xlu1 %370 }
0x1003   :  { %vm372_vm0 = vcmp.ge.f32.partialorder %v368_v12, %v371_v33 }
0x1004   :  { %v373_v34 = vsel %vm372_vm0, %v1475_v23, -1.0  ;;  %vm644_vm0 = vcmp.eq.f32.partialorder %v1475_v23, 4.0 }
0x1005   :  { %v374_v35 = vsel %vm179_vm2, %v373_v34, -inf }
0x1006   :  { %375 = vmax.xlane.f32.xlu0 %v374_v35 }
0x100a   :  { %v1663_v37 = vpop.xlane.xlu1 %189 }
0x100b   :  { %v191_v54 = vsub.f32 %v1471_v18, %v1663_v37 }
0x100d   :  { %v192_v51 = vmul.f32 1.442695, %v191_v54 }
0x1012   :  { %v1665_v38 = vpop.xlane.xlu1 %860 }
0x1013   :  { %v862_v40 = vsub.f32 %v1628_v0, %v1665_v38 }
0x1015   :  { %v863_v41 = vmul.f32 1.442695, %v862_v40 }
0x1017   :  { %1163 = vpow2.f32 %v863_v41 }
0x1018   :  { %1165 = vpow2.f32 %v192_v51 }
0x1019   :  { %1167 = vrcp.f32 %v1289_v61 }
0x101a   :  { %973 = vrot.lane.b32.xlu0 %v492_v7, %s1288_s9  ;;  %v499_v7 = vsub.f32 0.0, %v498_v4 }
0x101d   :  { %v1164_v46 = vpop.eup %1163 }
0x101e   :  { %v865_v48 = vsel %vm179_vm2, %v1164_v46, 0.0  ;;  %v1166_v57 = vpop.eup %1165 }
0x101f   :  { %866 = vadd.xlane.f32.xlu2 %v865_v48  ;;  %v194_v59 = vsel %vm179_vm2, %v1166_v57, 0.0  ;;  %v1168_v62 = vpop.eup %1167 }
0x1020   :  { %v223_v63 = vmul.f32 0.02, %v1168_v62  ;;  %vm227_vm6 = vweird.f32 %v1168_v62 }
0x1022   :  { %v224_v1 = vsub.f32 1.0, %v223_v63 }
0x1024   :  { %v225_v3 = vmul.f32 %v1168_v62, %v224_v1 }
0x1026   :  { %v1670_v53 = vpop.xlane.xlu2 %618  ;;  %v226_v5 = vadd.f32 %v1168_v62, %v225_v3  ;;  %v276_v3 = vsel %vm273_vm13, %v1486_v30, %v275_v2 }
0x1027   :  { %vm632_vm4 = vcmp.eq.f32.partialorder %v1475_v23, %v1670_v53  ;;  %vm638_vm7 = vcmp.eq.f32.partialorder %v1670_v53, 5.0 }
0x1028   :  { %v633_v49 = vsel %vm632_vm4, %v1612_v44, 0.0  ;;  %v201_v44 = vsel %vm200_vm5, %v1471_v18, 0.0  ;;  %v1684_v9 = vsel %vm227_vm6, %v1168_v62, %v226_v5  ;;  %v1085_v36 = vsel %vm638_vm7, 1.0, %v1290_v13 }
0x1029   :  { %v634_v52 = vsel %vm179_vm2, %v633_v49, 0.0  ;;  %v202_v60 = vsel %vm179_vm2, %v201_v44, 0.0  ;;  %v500_v10 = vmul.f32 %v499_v7, %v1684_v9  ;;  %v647_v21 = vsub.f32 1.0, %v1085_v36 }
0x102a   :  { %635 = vadd.xlane.f32.xlu2 %v634_v52  ;;  %v735_v8 = vpop.permute.xlu1 %734  ;;  %vm751_vm6 = vcmp.eq.f32.partialorder %v1475_v23, 5.0 }
0x102b   :  { %v1080_v18 = vadd.f32 2.3025851, %v500_v10  ;;  %v220_v10 = vmul.f32 %v1495_v39, %v1495_v39 }
0x102d   :  { %v1081_v19 = vadd.f32 -0.9189385, %v1080_v18 }
0x102e   :  { %v385_v49 = vpop.xlane.xlu2 %384 }
0x1042   :  { %517 = vperm.xlu2 %1117, %v496_v58  }
0x1044   :  { %195 = vadd.xlane.f32.xlu0 %v194_v59 }
0x104c   :  { %203 = vadd.xlane.f32.xlu0 %v202_v60 }
0x1055   :  { %v1688_v11 = vpop.xlane.xlu1 %857  ;;  %v970_v46 = vpop.f32.mrf.mxu0 }
0x1056   :  { %vm877_vm10 = vcmp.eq.f32.partialorder %v1688_v11, 5.0  ;;  %vm871_vm11 = vcmp.eq.f32.partialorder %v1475_v23, %v1688_v11  ;;  %v971_v47 = vadd.f32 %v970_v46, %v1606_v42 }
0x1057   :  { %v1094_v25 = vsel %vm877_vm10, 1.0, %v1290_v13  ;;  %v872_v28 = vsel %vm871_vm11, %v1628_v0, 0.0  ;;  %vm990_vm10 = vcmp.eq.f32.partialorder %v1475_v23, 7.0 }
0x1058   :  { %v886_v32 = vsub.f32 1.0, %v1094_v25  ;;  %v873_v34 = vsel %vm179_vm2, %v872_v28, 0.0 }
0x1065   :  { %v628_v18 = vpop.xlane.xlu1 %627 }
0x1079   :  { %v1690_v12 = vpop.xlane.xlu0 %375 }
0x107a   :  { %vm395_vm8 = vcmp.eq.f32.partialorder %v1690_v12, 5.0  ;;  %vm389_vm9 = vcmp.eq.f32.partialorder %v1475_v23, %v1690_v12  ;;  %v404_v45 = vsel %vm399_vm14, %v1690_v12, %v276_v3 }
0x107b   :  { %v1076_v14 = vsel %vm395_vm8, 1.0, %v1290_v13  ;;  %v390_v15 = vsel %vm389_vm9, %v1619_v50, 0.0  ;;  %v732_v50 = vadd.f32 %v731_v20, %v1606_v42  ;;  %v221_v13 = vsub.f32 0.0, %v220_v10 }
0x107c   :  { %v1697_v16 = vsub.f32 1.0, %v1076_v14  ;;  %v391_v17 = vsel %vm179_vm2, %v390_v15, 0.0  ;;  %vm883_vm9 = vcmp.eq.f32.partialorder %v1475_v23, 6.0 }
0x107d   :  { %392 = vadd.xlane.f32.xlu1 %v391_v17  ;;  %v737_v31 = vadd.f32 %v735_v8, %v732_v50  ;;  %v229_v14 = vmul.f32 %v1684_v9, %v221_v13 }
0x107e   :  { %v503_v22 = vmul.f32 %v1081_v19, %v1697_v16  ;;  %v509_v24 = vadd.f32 1.0, %v1697_v16  ;;  %v1706_v26 = vmul.f32 %v647_v21, %v1697_v16  ;;  %vm511_vm3 = vcmp.gt.f32.partialorder %v1697_v16, 0.0 }
0x107f   :  { %v738_v41 = vsub.f32 %v737_v31, %v732_v50  ;;  %vm514_vm4 = vmand %vm510_vm1, %vm511_vm3  ;;  %v1070_v20 = vadd.f32 2.3025851, %v229_v14 }
0x1080   :  { %505 = vrot.lane.b32.xlu0 %v503_v22, %s1284_s27  ;;  %v643_v29 = vadd.f32 %v509_v24, %v1697_v16  ;;  %v1714_v35 = vmul.f32 %v886_v32, %v1706_v26  ;;  %vm645_vm5 = vmand %vm644_vm0, %vm511_vm3  ;;  %vm752_vm7 = vcmp.gt.f32.partialorder %v1706_v26, 0.0 }
0x1081   :  { %v739_v0 = vmul.f32 %v738_v41, %v738_v41  ;;  %v1071_v39 = vadd.f32 -0.9189385, %v1070_v20  ;;  %vm1760_vm8 = vmand %vm751_vm6, %vm752_vm7 }
0x1082   :  { %v750_v33 = vadd.f32 %v1706_v26, %v643_v29  ;;  %vm991_vm11 = vcmp.gt.f32.partialorder %v1714_v35, 0.0  ;;  %vm884_vm12 = vmand %vm883_vm9, %vm752_vm7 }
0x1083   :  { %v740_v54 = vsub.f32 0.0, %v739_v0  ;;  %vm994_vm13 = vmand %vm990_vm10, %vm991_vm11 }
0x1084   :  { %v882_v40 = vadd.f32 %v750_v33, %v1706_v26 }
0x1085   :  { %874 = vadd.xlane.f32.xlu1 %v873_v34  ;;  %v741_v56 = vmul.f32 %v740_v54, %v1684_v9 }
0x1086   :  { %v989_v43 = vadd.f32 %v1714_v35, %v882_v40 }
0x1087   :  { %v1089_v44 = vadd.f32 2.3025851, %v741_v56 }
0x1088   :  { %758 = vperm.xlu0 %1118, %v737_v31   ;;  %1003 = vst.msk [vmem:[#allocation10] sm:$0x1] %vm150_vm15, %v989_v43 }
0x1089   :  { %v1090_v62 = vadd.f32 -0.9189385, %v1089_v44  ;;  %1047 = dma.vmem_to_hbm [thread:$0]  %s1043_s10, 16, %s1045_s5, [#allocation11]  }
0x108b   :  { %v744_v42 = vmul.f32 %v1090_v62, %v1706_v26 }
0x108c   :  { %v974_v48 = vpop.permute.xlu0 %973 }
0x108d   :  { %v976_v52 = vadd.f32 %v974_v48, %v971_v47 }
0x108f   :  { %v977_v51 = vsub.f32 %v976_v52, %v971_v47 }
0x1091   :  { %v978_v55 = vmul.f32 %v977_v51, %v977_v51 }
0x1092   :  { %v1722_v59 = vpop.xlane.xlu2 %866 }
0x1093   :  { %v979_v57 = vsub.f32 0.0, %v978_v55 }
0x1095   :  { %v980_v58 = vmul.f32 %v979_v57, %v1684_v9 }
0x1097   :  { %v1098_v60 = vadd.f32 2.3025851, %v980_v58 }
0x1099   :  { %v1099_v61 = vadd.f32 -0.9189385, %v1098_v60 }
0x109b   :  { %v983_v63 = vmul.f32 %v1099_v61, %v1714_v35 }
0x109d   :  { %v636_v1 = vpop.xlane.xlu2 %635  ;;  %985 = vrot.lane.b32.xlu2 %v983_v63, %s1284_s27 }
0x109e   :  { %746 = vrot.lane.b32.xlu1 %v744_v42, %s1284_s27  ;;  %s1294_s27 = smov [#allocation9]  }
0x109f   :  { %s1031_s20 = sshll.u32 %s1294_s27, 4  ;;  %s1032_s20 = int_to_ptr.vmem [resolvable:$true] %s1031_s20 }
0x10a5   :  { %v518_v4 = vpop.permute.xlu2 %517 }
0x10a6   :  { %v520_v5 = vsel %vm514_vm4, %v518_v4, %v404_v45  ;;  %997 = vperm.xlu1 %1119, %v976_v52  }
0x10a7   :  { %v1744_v7 = vsel %vm645_vm5, %v1670_v53, %v520_v5 }
0x10b7   :  { %v196_v8 = vpop.xlane.xlu0 %195 }
0x10b8   :  { %1169 = vlog2.f32 %v196_v8 }
0x10b9   :  { %1171 = vlog2.f32 %v385_v49 }
0x10ba   :  { %1173 = vlog2.f32 %v628_v18 }
0x10bb   :  { %1175 = vlog2.f32 %v1722_v59 }
0x10be   :  { %v1170_v30 = vpop.eup %1169 }
0x10bf   :  { %v198_v12 = vmul.f32 0.6931472, %v1170_v30  ;;  %v1172_v36 = vpop.eup %1171  ;;  %v204_v21 = vpop.xlane.xlu0 %203 }
0x10c0   :  { %v1174_v15 = vpop.eup %1173  ;;  %v387_v19 = vmul.f32 0.6931472, %v1172_v36 }
0x10c1   :  { %v199_v17 = vadd.f32 %v198_v12, %v1663_v37  ;;  %v630_v53 = vmul.f32 0.6931472, %v1174_v15  ;;  %v1176_v40 = vpop.eup %1175 }
0x10c2   :  { %v388_v25 = vadd.f32 %v387_v19, %v1635_v6  ;;  %v869_v41 = vmul.f32 0.6931472, %v1176_v40 }
0x10c3   :  { %v205_v22 = vsub.f32 %v204_v21, %v199_v17  ;;  %v631_v24 = vadd.f32 %v630_v53, %v1656_v27 }
0x10c4   :  { %v870_v27 = vadd.f32 %v869_v41, %v1665_v38 }
0x10c5   :  { %v637_v29 = vsub.f32 %v636_v1, %v631_v24  ;;  %v232_v28 = vadd.f32 %v1071_v39, %v205_v22 }
0x10c7   :  { %v641_v9 = vmul.f32 %v637_v29, %v1697_v16 }
0x10f0   :  { %v393_v50 = vpop.xlane.xlu1 %392 }
0x10f1   :  { %v394_v31 = vsub.f32 %v393_v50, %v388_v25 }
0x10f2   :  { %v506_v33 = vpop.permute.xlu0 %505 }
0x10f3   :  { %v398_v32 = vadd.f32 %v394_v31, %v232_v28 }
0x10f5   :  { %v508_v34 = vadd.f32 %v506_v33, %v398_v32 }
0x10f7   :  { %v642_v37 = vadd.f32 %v641_v9, %v508_v34  ;;  %v986_v49 = vpop.permute.xlu2 %985 }
0x10f8   :  { %v875_v43 = vpop.xlane.xlu1 %874 }
0x10f9   :  { %v876_v46 = vsub.f32 %v875_v43, %v870_v27 }
0x10fa   :  { %v759_v48 = vpop.permute.xlu0 %758 }
0x10fb   :  { %v880_v6 = vmul.f32 %v876_v46, %v1706_v26  ;;  %v761_v38 = vsel %vm1760_vm8, %v759_v48, %v1744_v7 }
0x10fc   :  { %v885_v35 = vsel %vm884_vm12, %v1688_v11, %v761_v38 }
0x1110   :  { %v747_v0 = vpop.permute.xlu1 %746 }
0x1111   :  { %v749_v47 = vadd.f32 %v747_v0, %v642_v37 }
0x1113   :  { %v881_v16 = vadd.f32 %v880_v6, %v749_v47 }
0x1115   :  { %v988_v54 = vadd.f32 %v986_v49, %v881_v16 }
0x1117   :  { %1002 = vst.msk [vmem:[#allocation9] sm:$0x1] %vm150_vm15, %v988_v54 }
0x1118   :  { %v998_v23 = vpop.permute.xlu1 %997 }
0x1119   :  { %v1000_v51 = vsel %vm994_vm13, %v998_v23, %v885_v35 }
0x111a   :  { %1001 = vst.msk [vmem:[#allocation7] sm:$0x1] %vm179_vm2, %v1000_v51 }
0x111b   :  { %1025 = dma.vmem_to_hbm [thread:$0]  %s1021_s6, 16, %s1023_s1, [#allocation8]  }
0x111c   :  { %1036 = dma.vmem_to_hbm [thread:$0]  %s1032_s20, 16, %s1034_s28, [#allocation8]  }
0x111d   :  { %1273 = dma.done.wait [#allocation6], 16  }
0x111e   :  { %1274 = vsyncadd [#allocation6], 4294967280 }
0x111f   :  { %1275 = dma.done.wait [#allocation8], 32  }
0x1120   :  { %1276 = vsyncadd [#allocation8], 4294967264 }
0x1121   :  { %1277 = dma.done.wait [#allocation11], 16  }
0x1122   :  { %1278 = vsyncadd [#allocation11], 4294967280 }
0x1123   :  { %1064 = vsyncpa [#allocation6], 1 }
0x1124   :  { %1065 = vsyncpa [#allocation8], 1 }
0x1125   :  { %1066 = vsyncpa [#allocation11], 1 }

</bundles_post_ra>
